<compile_context>
chip_gen: v7x
topology: tpu7x:2x2x1
jax: 0.10.0
libtpu: 0.0.40
codegen_flags: <defaults>
</compile_context>

<pallas_src>
import functools

import jax
import jax.numpy as jnp
from jax.experimental import pallas as pl
from jax.experimental.pallas import tpu as pltpu

_LANE = 128
_SUBLANE = 8
_NEG = -1e9          # bias padding for fake class columns -> exp() underflows to 0


def _round_up(v, m):
    return ((v + m - 1) // m) * m


def _pad2(a, rows, cols, fill=0.0):
    return jnp.pad(a, ((0, rows - a.shape[0]), (0, cols - a.shape[1])),
                   constant_values=fill)


# ----------------------------------------------------------------------------
# Fused kernel: all GIN layers + global_mean_pool + MLP head + log_softmax
# ----------------------------------------------------------------------------
def fused_gin_kernel(adj_ref, x0_ref,
                     w1_ref, b1_ref, w2_ref, b2_ref, scl_ref, sft_ref,
                     pool_ref, invc_ref, hw1_ref, hb1_ref, hw2_ref, hb2_ref,
                     out_ref, h_ref):
    layer = pl.program_id(0)
    num_layers = pl.num_programs(0)

    @pl.when(layer == 0)
    def _():
        h_ref[...] = x0_ref[...]
        out_ref[...] = jnp.zeros_like(out_ref)

    h = h_ref[...]
    # neighbor sum on the MXU: agg[i] = sum_{(j->i) in E} h[j]   (adj bf16-exact)
    agg = jnp.dot(adj_ref[...], h.astype(jnp.bfloat16),
                  preferred_element_type=jnp.float32)
    z = h + agg                                   # (1 + eps) * x + agg, eps = 0
    # MLP: Linear -> ReLU -> Linear -> ReLU
    z = jnp.maximum(
        jnp.dot(z.astype(jnp.bfloat16), w1_ref[0],
                preferred_element_type=jnp.float32) + b1_ref[0], 0.0)
    z = jnp.maximum(
        jnp.dot(z.astype(jnp.bfloat16), w2_ref[0],
                preferred_element_type=jnp.float32) + b2_ref[0], 0.0)
    # BatchNorm1d (inference) folded into per-channel scale/shift
    h_ref[...] = z * scl_ref[0] + sft_ref[0]

    @pl.when(layer == num_layers - 1)
    def _():
        hf = h_ref[...].astype(jnp.bfloat16)
        # global_mean_pool = (one-hot membership @ h) * 1/count
        pooled = jnp.dot(pool_ref[...], hf,
                         preferred_element_type=jnp.float32) * invc_ref[...]
        t = jnp.maximum(
            jnp.dot(pooled.astype(jnp.bfloat16), hw1_ref[...],
                    preferred_element_type=jnp.float32) + hb1_ref[...], 0.0)
        # dropout(p=0.5): eval-mode identity
        logits = (jnp.dot(t.astype(jnp.bfloat16), hw2_ref[...],
                          preferred_element_type=jnp.float32) + hb2_ref[...])
        # numerically-stable log_softmax (padded classes carry bias=-1e9)
        m = jnp.max(logits, axis=-1, keepdims=True)
        lse = jnp.log(jnp.sum(jnp.exp(logits - m), axis=-1, keepdims=True)) + m
        out_ref[...] = logits - lse


# ----------------------------------------------------------------------------
# Wrapper: pad to lane/sublane-friendly shapes, fold BN, one pallas_call
# ----------------------------------------------------------------------------
@functools.partial(jax.jit, static_argnums=(4,))
def pyg_gin0_forward(params, x, edge_index, batch, num_graphs):
    """x: [N, F] f32, edge_index: [2, E] int32 (src, dst), batch: [N] int32."""
    n, f = x.shape
    num_layers = len(params["convs"])
    hidden = params["convs"][0][0].shape[1]
    num_classes = params["lin2_w"].shape[1]

    n_p = _round_up(n, _LANE)                       # adjacency lane dim
    d_p = _round_up(max(f, hidden), _LANE)          # shared feature/hidden dim
    c_p = _round_up(num_classes, _LANE)
    g_p = _round_up(num_graphs, _SUBLANE)

    # dense adjacency A[dst, src] with edge multiplicity; counts exact in bf16
    src, dst = edge_index[0], edge_index[1]
    adj = (jnp.zeros((n_p, n_p), jnp.float32).at[dst, src]
           .add(1.0).astype(jnp.bfloat16))

    x_p = _pad2(x, n_p, d_p)

    # stack + pad per-layer GIN weights; fold BN into scale/shift (pads = 0 so
    # fake hidden channels stay exactly zero layer-to-layer)
    w1s, b1s, w2s, b2s, scls, sfts = [], [], [], [], [], []
    for (w1, b1, w2, b2, gamma, beta, mean, var) in params["convs"]:
        scale = gamma * jax.lax.rsqrt(var + 1e-5)
        shift = beta - mean * scale
        w1s.append(_pad2(w1, d_p, d_p).astype(jnp.bfloat16))
        w2s.append(_pad2(w2, d_p, d_p).astype(jnp.bfloat16))
        b1s.append(_pad2(b1, 1, d_p))
        b2s.append(_pad2(b2, 1, d_p))
        scls.append(_pad2(scale, 1, d_p))
        sfts.append(_pad2(shift, 1, d_p))
    w1s, w2s = jnp.stack(w1s), jnp.stack(w2s)
    b1s, b2s = jnp.stack(b1s), jnp.stack(b2s)
    scls, sfts = jnp.stack(scls), jnp.stack(sfts)

    # mean-pool as one-hot membership (bf16-exact 0/1) + reciprocal counts
    batch_p = jnp.full((n_p,), -1, jnp.int32).at[:n].set(batch)
    onehot = (batch_p[None, :] ==
              jnp.arange(g_p, dtype=jnp.int32)[:, None]).astype(jnp.float32)
    counts = onehot.sum(axis=1, keepdims=True)
    invc = jnp.where(counts > 0, 1.0 / jnp.maximum(counts, 1.0), 0.0)
    pool = onehot.astype(jnp.bfloat16)

    hw1 = _pad2(params["lin1_w"], d_p, d_p).astype(jnp.bfloat16)
    hb1 = _pad2(params["lin1_b"], 1, d_p)
    hw2 = _pad2(params["lin2_w"], d_p, c_p).astype(jnp.bfloat16)
    hb2 = _pad2(params["lin2_b"], 1, c_p, fill=_NEG)   # kill padded classes

    args = (adj, x_p, w1s, b1s, w2s, b2s, scls, sfts,
            pool, invc, hw1, hb1, hw2, hb2)

    flops = (num_layers * (2 * n_p * n_p * d_p + 4 * n_p * d_p * d_p)
             + 2 * g_p * n_p * d_p + 2 * g_p * d_p * d_p + 2 * g_p * d_p * c_p)
    bytes_accessed = (sum(a.size * a.dtype.itemsize for a in args)
                      + g_p * c_p * 4)

    out = pl.pallas_call(
        fused_gin_kernel,
        out_shape=jax.ShapeDtypeStruct((g_p, c_p), jnp.float32),
        grid_spec=pltpu.PrefetchScalarGridSpec(
            num_scalar_prefetch=0,
            grid=(num_layers,),
            in_specs=[
                pl.BlockSpec((n_p, n_p), lambda l: (0, 0)),         # adj (resident)
                pl.BlockSpec((n_p, d_p), lambda l: (0, 0)),         # x0
                pl.BlockSpec((1, d_p, d_p), lambda l: (l, 0, 0)),   # w1[l]
                pl.BlockSpec((1, 1, d_p), lambda l: (l, 0, 0)),     # b1[l]
                pl.BlockSpec((1, d_p, d_p), lambda l: (l, 0, 0)),   # w2[l]
                pl.BlockSpec((1, 1, d_p), lambda l: (l, 0, 0)),     # b2[l]
                pl.BlockSpec((1, 1, d_p), lambda l: (l, 0, 0)),     # BN scale[l]
                pl.BlockSpec((1, 1, d_p), lambda l: (l, 0, 0)),     # BN shift[l]
                pl.BlockSpec((g_p, n_p), lambda l: (0, 0)),         # pool one-hot
                pl.BlockSpec((g_p, 1), lambda l: (0, 0)),           # 1/count
                pl.BlockSpec((d_p, d_p), lambda l: (0, 0)),         # lin1 W
                pl.BlockSpec((1, d_p), lambda l: (0, 0)),           # lin1 b
                pl.BlockSpec((d_p, c_p), lambda l: (0, 0)),         # lin2 W
                pl.BlockSpec((1, c_p), lambda l: (0, 0)),           # lin2 b
            ],
            out_specs=pl.BlockSpec((g_p, c_p), lambda l: (0, 0)),
            scratch_shapes=[pltpu.VMEM((n_p, d_p), jnp.float32)],   # node features
        ),
        compiler_params=pltpu.CompilerParams(
            dimension_semantics=("arbitrary",),      # layers are sequential
            vmem_limit_bytes=64 << 20),
        cost_estimate=pl.CostEstimate(
            flops=flops, transcendentals=g_p * c_p + g_p,
            bytes_accessed=bytes_accessed),
    )(*args)

    return out[:num_graphs, :num_classes]


# ----------------------------------------------------------------------------
# Pure-JAX reference with identical bf16-matmul / f32-accumulate numerics
# ----------------------------------------------------------------------------
def gin_reference(params, x, edge_index, batch, num_graphs):
    n = x.shape[0]
    src, dst = edge_index[0], edge_index[1]
    adj = jnp.zeros((n, n), jnp.float32).at[dst, src].add(1.0).astype(jnp.bfloat16)
    h = x
    for (w1, b1, w2, b2, gamma, beta, mean, var) in params["convs"]:
        scale = gamma * jax.lax.rsqrt(var + 1e-5)
        shift = beta - mean * scale
        agg = jnp.dot(adj, h.astype(jnp.bfloat16),
                      preferred_element_type=jnp.float32)
        z = h + agg
        z = jnp.maximum(jnp.dot(z.astype(jnp.bfloat16), w1.astype(jnp.bfloat16),
                                preferred_element_type=jnp.float32) + b1, 0.0)
        z = jnp.maximum(jnp.dot(z.astype(jnp.bfloat16), w2.astype(jnp.bfloat16),
                                preferred_element_type=jnp.float32) + b2, 0.0)
        h = z * scale + shift
    onehot = (batch[None, :] ==
              jnp.arange(num_graphs)[:, None]).astype(jnp.float32)
    counts = jnp.maximum(onehot.sum(axis=1, keepdims=True), 1.0)
    pooled = jnp.dot(onehot.astype(jnp.bfloat16), h.astype(jnp.bfloat16),
                     preferred_element_type=jnp.float32) / counts
    t = jnp.maximum(
        jnp.dot(pooled.astype(jnp.bfloat16),
                params["lin1_w"].astype(jnp.bfloat16),
                preferred_element_type=jnp.float32) + params["lin1_b"], 0.0)
    logits = (jnp.dot(t.astype(jnp.bfloat16),
                      params["lin2_w"].astype(jnp.bfloat16),
                      preferred_element_type=jnp.float32) + params["lin2_b"])
    return jax.nn.log_softmax(logits, axis=-1)


# ----------------------------------------------------------------------------
# Deterministic parameter construction (PyTorch-style init, fresh BN stats)
# ----------------------------------------------------------------------------
def make_params(key, num_features, hidden, num_classes, num_layers):
    def linear(k, fan_in, fan_out):
        kw, kb = jax.random.split(k)
        lim = 1.0 / jnp.sqrt(fan_in)
        w = jax.random.uniform(kw, (fan_in, fan_out), jnp.float32, -lim, lim)
        b = jax.random.uniform(kb, (1, fan_out), jnp.float32, -lim, lim)
        return w, b

    convs = []
    in_dim = num_features
    for _ in range(num_layers):
        key, k1, k2 = jax.random.split(key, 3)
        w1, b1 = linear(k1, in_dim, hidden)
        w2, b2 = linear(k2, hidden, hidden)
        gamma = jnp.ones((1, hidden), jnp.float32)
        beta = jnp.zeros((1, hidden), jnp.float32)
        mean = jnp.zeros((1, hidden), jnp.float32)
        var = jnp.ones((1, hidden), jnp.float32)
        convs.append((w1, b1, w2, b2, gamma, beta, mean, var))
        in_dim = hidden

    key, k1, k2 = jax.random.split(key, 3)
    lin1_w, lin1_b = linear(k1, hidden, hidden)
    lin2_w, lin2_b = linear(k2, hidden, num_classes)
    return {"convs": convs,
            "lin1_w": lin1_w, "lin1_b": lin1_b,
            "lin2_w": lin2_w, "lin2_b": lin2_b}


# ----------------------------------------------------------------------------
if __name__ == "__main__":
    NUM_FEATURES = 16
    HIDDEN = 32
    NUM_CLASSES = 8
    NUM_LAYERS = 3          # conv1 + 2 extra convs
    NUM_NODES = 32
    NUM_EDGES = 64
    NUM_GRAPHS = 4

    key = jax.random.PRNGKey(0)
    key, kx, ke = jax.random.split(key, 3)

    x = jax.random.normal(kx, (NUM_NODES, NUM_FEATURES), jnp.float32)
    edge_index = jax.random.randint(ke, (2, NUM_EDGES), 0, NUM_NODES,
                                    dtype=jnp.int32)
    # 4 graphs of 8 nodes each
    batch = jnp.repeat(jnp.arange(NUM_GRAPHS, dtype=jnp.int32),
                       NUM_NODES // NUM_GRAPHS)

    params = make_params(key, NUM_FEATURES, HIDDEN, NUM_CLASSES, NUM_LAYERS)

    out = pyg_gin0_forward(params, x, edge_index, batch, NUM_GRAPHS)
    out = jax.block_until_ready(out)

    assert out.shape == (NUM_GRAPHS, NUM_CLASSES)
    # rows of log_softmax must (log-)sum to ~1
    assert jnp.allclose(jnp.exp(out).sum(axis=-1), 1.0, atol=1e-3)
    # match the bf16-matmul reference
    ref = gin_reference(params, x, edge_index, batch, NUM_GRAPHS)
    assert jnp.allclose(out, ref, atol=1e-2, rtol=1e-2)
    print("KERNEL_OK")
</pallas_src>

<mosaic_0001>
module attributes {stable_mosaic.version = 11 : i64} {
  func.func private @main(%arg0: i32) attributes {dimension_semantics = [#tpu.dimension_semantics<core_parallel>], iteration_bounds = array<i64: 2>, tpu.core_type = #tpu.core_type<sc_scalar_subcore>, window_params = []} {
    return
  }
}

module attributes {stable_mosaic.version = 11 : i64} {
  func.func private @main(%arg0: i32) attributes {dimension_semantics = [#tpu.dimension_semantics<core_parallel>], iteration_bounds = array<i64: 2>, tpu.core_type = #tpu.core_type<sc_scalar_subcore>, window_params = []} {
    return
  }
}

module attributes {stable_mosaic.version = 11 : i64} {
  func.func @fused_gin_kernel(%arg0: i32, %arg1: memref<128x128xbf16, #tpu.memory_space<vmem>>, %arg2: memref<128x128xf32, #tpu.memory_space<vmem>>, %arg3: memref<1x128x128xbf16, #tpu.memory_space<vmem>>, %arg4: memref<1x1x128xf32, #tpu.memory_space<vmem>>, %arg5: memref<1x128x128xbf16, #tpu.memory_space<vmem>>, %arg6: memref<1x1x128xf32, #tpu.memory_space<vmem>>, %arg7: memref<1x1x128xf32, #tpu.memory_space<vmem>>, %arg8: memref<1x1x128xf32, #tpu.memory_space<vmem>>, %arg9: memref<8x128xbf16, #tpu.memory_space<vmem>>, %arg10: memref<8x1xf32, #tpu.memory_space<vmem>>, %arg11: memref<128x128xbf16, #tpu.memory_space<vmem>>, %arg12: memref<1x128xf32, #tpu.memory_space<vmem>>, %arg13: memref<128x128xbf16, #tpu.memory_space<vmem>>, %arg14: memref<1x128xf32, #tpu.memory_space<vmem>>, %arg15: memref<8x128xf32, #tpu.memory_space<vmem>>, %arg16: memref<128x128xf32, #tpu.memory_space<vmem>>) attributes {dimension_semantics = [#tpu.dimension_semantics<arbitrary>], iteration_bounds = array<i64: 3>, scalar_prefetch = 0 : i64, scratch_operands = 1 : i64, tpu.core_type = #tpu.core_type<tc>, window_params = [{pipeline_mode = #tpu.pipeline_mode<synchronous>, transform_indices = @transform_0, window_bounds = array<i64: 128, 128>}, {pipeline_mode = #tpu.pipeline_mode<synchronous>, transform_indices = @transform_1, window_bounds = array<i64: 128, 128>}, {transform_indices = @transform_2, window_bounds = array<i64: 1, 128, 128>}, {transform_indices = @transform_3, window_bounds = array<i64: 1, 1, 128>}, {transform_indices = @transform_4, window_bounds = array<i64: 1, 128, 128>}, {transform_indices = @transform_5, window_bounds = array<i64: 1, 1, 128>}, {transform_indices = @transform_6, window_bounds = array<i64: 1, 1, 128>}, {transform_indices = @transform_7, window_bounds = array<i64: 1, 1, 128>}, {pipeline_mode = #tpu.pipeline_mode<synchronous>, transform_indices = @transform_8, window_bounds = array<i64: 8, 128>}, {pipeline_mode = #tpu.pipeline_mode<synchronous>, transform_indices = @transform_9, window_bounds = array<i64: 8, 1>}, {pipeline_mode = #tpu.pipeline_mode<synchronous>, transform_indices = @transform_10, window_bounds = array<i64: 128, 128>}, {pipeline_mode = #tpu.pipeline_mode<synchronous>, transform_indices = @transform_11, window_bounds = array<i64: 1, 128>}, {pipeline_mode = #tpu.pipeline_mode<synchronous>, transform_indices = @transform_12, window_bounds = array<i64: 128, 128>}, {pipeline_mode = #tpu.pipeline_mode<synchronous>, transform_indices = @transform_13, window_bounds = array<i64: 1, 128>}, {pipeline_mode = #tpu.pipeline_mode<synchronous>, transform_indices = @transform_14, window_bounds = array<i64: 8, 128>}]} {
    %c0_i32 = arith.constant 0 : i32
    %0 = arith.cmpi eq, %arg0, %c0_i32 : i32
    %1 = arith.extui %0 : i1 to i32
    %c0_i32_0 = arith.constant 0 : i32
    %2 = arith.cmpi ne, %1, %c0_i32_0 : i32
    scf.if %2 {
      %c0_29 = arith.constant 0 : index
      %c0_30 = arith.constant 0 : index
      %40 = vector.load %arg2[%c0_29, %c0_30] : memref<128x128xf32, #tpu.memory_space<vmem>>, vector<128x128xf32>
      %c0_31 = arith.constant 0 : index
      %c0_32 = arith.constant 0 : index
      %41 = vector.load %arg16[%c0_31, %c0_32] : memref<128x128xf32, #tpu.memory_space<vmem>>, vector<128x128xf32>
      tpu.vector_store %arg16[%c0_31, %c0_32], %40 {strides = array<i32>} : memref<128x128xf32, #tpu.memory_space<vmem>>, vector<128x128xf32>,
      %cst_33 = arith.constant 0.000000e+00 : f32
      %42 = vector.broadcast %cst_33 : f32 to vector<8x128xf32>
      %c0_34 = arith.constant 0 : index
      %c0_35 = arith.constant 0 : index
      %43 = vector.load %arg15[%c0_34, %c0_35] : memref<8x128xf32, #tpu.memory_space<vmem>>, vector<8x128xf32>
      tpu.vector_store %arg15[%c0_34, %c0_35], %42 {strides = array<i32>} : memref<8x128xf32, #tpu.memory_space<vmem>>, vector<8x128xf32>,
    } else {
    }
    %c0 = arith.constant 0 : index
    %c0_1 = arith.constant 0 : index
    %3 = vector.load %arg16[%c0, %c0_1] : memref<128x128xf32, #tpu.memory_space<vmem>>, vector<128x128xf32>
    %c0_2 = arith.constant 0 : index
    %c0_3 = arith.constant 0 : index
    %4 = vector.load %arg1[%c0_2, %c0_3] : memref<128x128xbf16, #tpu.memory_space<vmem>>, vector<128x128xbf16>
    %5 = arith.truncf %3 : vector<128x128xf32> to vector<128x128xbf16>
    %cst = arith.constant dense<0.000000e+00> : vector<128x128xf32>
    %6 = tpu.matmul %4, %5, %cst {dimension_numbers = #tpu.dot_dimension_numbers<[1], [0], [0], [1], [0, 0, 1, 1], [], []>} : vector<128x128xbf16>, vector<128x128xbf16>, vector<128x128xf32> -> vector<128x128xf32>
    %7 = arith.addf %3, %6 : vector<128x128xf32>
    %8 = arith.truncf %7 : vector<128x128xf32> to vector<128x128xbf16>
    %c0_4 = arith.constant 0 : index
    %c0_5 = arith.constant 0 : index
    %c0_6 = arith.constant 0 : index
    %9 = vector.load %arg3[%c0_4, %c0_5, %c0_6] : memref<1x128x128xbf16, #tpu.memory_space<vmem>>, vector<1x128x128xbf16>
    %10 = vector.shape_cast %9 : vector<1x128x128xbf16> to vector<128x128xbf16>
    %cst_7 = arith.constant dense<0.000000e+00> : vector<128x128xf32>
    %11 = tpu.matmul %8, %10, %cst_7 {dimension_numbers = #tpu.dot_dimension_numbers<[1], [0], [0], [1], [0, 0, 1, 1], [], []>} : vector<128x128xbf16>, vector<128x128xbf16>, vector<128x128xf32> -> vector<128x128xf32>
    %c0_8 = arith.constant 0 : index
    %c0_9 = arith.constant 0 : index
    %c0_10 = arith.constant 0 : index
    %12 = vector.load %arg4[%c0_8, %c0_9, %c0_10] : memref<1x1x128xf32, #tpu.memory_space<vmem>>, vector<1x1x128xf32>
    %13 = vector.shape_cast %12 : vector<1x1x128xf32> to vector<1x128xf32>
    %14 = vector.broadcast %13 : vector<1x128xf32> to vector<128x128xf32>
    %15 = arith.addf %11, %14 : vector<128x128xf32>
    %cst_11 = arith.constant 0.000000e+00 : f32
    %16 = vector.broadcast %cst_11 : f32 to vector<128x128xf32>
    %17 = arith.maximumf %15, %16 : vector<128x128xf32>
    %18 = arith.truncf %17 : vector<128x128xf32> to vector<128x128xbf16>
    %c0_12 = arith.constant 0 : index
    %c0_13 = arith.constant 0 : index
    %c0_14 = arith.constant 0 : index
    %19 = vector.load %arg5[%c0_12, %c0_13, %c0_14] : memref<1x128x128xbf16, #tpu.memory_space<vmem>>, vector<1x128x128xbf16>
    %20 = vector.shape_cast %19 : vector<1x128x128xbf16> to vector<128x128xbf16>
    %cst_15 = arith.constant dense<0.000000e+00> : vector<128x128xf32>
    %21 = tpu.matmul %18, %20, %cst_15 {dimension_numbers = #tpu.dot_dimension_numbers<[1], [0], [0], [1], [0, 0, 1, 1], [], []>} : vector<128x128xbf16>, vector<128x128xbf16>, vector<128x128xf32> -> vector<128x128xf32>
    %c0_16 = arith.constant 0 : index
    %c0_17 = arith.constant 0 : index
    %c0_18 = arith.constant 0 : index
    %22 = vector.load %arg6[%c0_16, %c0_17, %c0_18] : memref<1x1x128xf32, #tpu.memory_space<vmem>>, vector<1x1x128xf32>
    %23 = vector.shape_cast %22 : vector<1x1x128xf32> to vector<1x128xf32>
    %24 = vector.broadcast %23 : vector<1x128xf32> to vector<128x128xf32>
    %25 = arith.addf %21, %24 : vector<128x128xf32>
    %cst_19 = arith.constant 0.000000e+00 : f32
    %26 = vector.broadcast %cst_19 : f32 to vector<128x128xf32>
    %27 = arith.maximumf %25, %26 : vector<128x128xf32>
    %c0_20 = arith.constant 0 : index
    %c0_21 = arith.constant 0 : index
    %c0_22 = arith.constant 0 : index
    %28 = vector.load %arg7[%c0_20, %c0_21, %c0_22] : memref<1x1x128xf32, #tpu.memory_space<vmem>>, vector<1x1x128xf32>
    %29 = vector.shape_cast %28 : vector<1x1x128xf32> to vector<1x128xf32>
    %30 = vector.broadcast %29 : vector<1x128xf32> to vector<128x128xf32>
    %31 = arith.mulf %27, %30 : vector<128x128xf32>
    %c0_23 = arith.constant 0 : index
    %c0_24 = arith.constant 0 : index
    %c0_25 = arith.constant 0 : index
    %32 = vector.load %arg8[%c0_23, %c0_24, %c0_25] : memref<1x1x128xf32, #tpu.memory_space<vmem>>, vector<1x1x128xf32>
    %33 = vector.shape_cast %32 : vector<1x1x128xf32> to vector<1x128xf32>
    %34 = vector.broadcast %33 : vector<1x128xf32> to vector<128x128xf32>
    %35 = arith.addf %31, %34 : vector<128x128xf32>
    %c0_26 = arith.constant 0 : index
    %c0_27 = arith.constant 0 : index
    %36 = vector.load %arg16[%c0_26, %c0_27] : memref<128x128xf32, #tpu.memory_space<vmem>>, vector<128x128xf32>
    tpu.vector_store %arg16[%c0_26, %c0_27], %35 {strides = array<i32>} : memref<128x128xf32, #tpu.memory_space<vmem>>, vector<128x128xf32>,
    %c2_i32 = arith.constant 2 : i32
    %37 = arith.cmpi eq, %arg0, %c2_i32 : i32
    %38 = arith.extui %37 : i1 to i32
    %c0_i32_28 = arith.constant 0 : i32
    %39 = arith.cmpi ne, %38, %c0_i32_28 : i32
    scf.if %39 {
      %c0_29 = arith.constant 0 : index
      %c0_30 = arith.constant 0 : index
      %40 = vector.load %arg16[%c0_29, %c0_30] : memref<128x128xf32, #tpu.memory_space<vmem>>, vector<128x128xf32>
      %41 = arith.truncf %40 : vector<128x128xf32> to vector<128x128xbf16>
      %c0_31 = arith.constant 0 : index
      %c0_32 = arith.constant 0 : index
      %42 = vector.load %arg9[%c0_31, %c0_32] : memref<8x128xbf16, #tpu.memory_space<vmem>>, vector<8x128xbf16>
      %cst_33 = arith.constant dense<0.000000e+00> : vector<8x128xf32>
      %43 = tpu.matmul %42, %41, %cst_33 {dimension_numbers = #tpu.dot_dimension_numbers<[1], [0], [0], [1], [0, 0, 1, 1], [], []>} : vector<8x128xbf16>, vector<128x128xbf16>, vector<8x128xf32> -> vector<8x128xf32>
      %c0_34 = arith.constant 0 : index
      %c0_35 = arith.constant 0 : index
      %44 = vector.load %arg10[%c0_34, %c0_35] : memref<8x1xf32, #tpu.memory_space<vmem>>, vector<8x1xf32>
      %45 = vector.broadcast %44 : vector<8x1xf32> to vector<8x128xf32>
      %46 = arith.mulf %43, %45 : vector<8x128xf32>
      %47 = arith.truncf %46 : vector<8x128xf32> to vector<8x128xbf16>
      %c0_36 = arith.constant 0 : index
      %c0_37 = arith.constant 0 : index
      %48 = vector.load %arg11[%c0_36, %c0_37] : memref<128x128xbf16, #tpu.memory_space<vmem>>, vector<128x128xbf16>
      %cst_38 = arith.constant dense<0.000000e+00> : vector<8x128xf32>
      %49 = tpu.matmul %47, %48, %cst_38 {dimension_numbers = #tpu.dot_dimension_numbers<[1], [0], [0], [1], [0, 0, 1, 1], [], []>} : vector<8x128xbf16>, vector<128x128xbf16>, vector<8x128xf32> -> vector<8x128xf32>
      %c0_39 = arith.constant 0 : index
      %c0_40 = arith.constant 0 : index
      %50 = vector.load %arg12[%c0_39, %c0_40] : memref<1x128xf32, #tpu.memory_space<vmem>>, vector<1x128xf32>
      %51 = vector.broadcast %50 : vector<1x128xf32> to vector<8x128xf32>
      %52 = arith.addf %49, %51 : vector<8x128xf32>
      %cst_41 = arith.constant 0.000000e+00 : f32
      %53 = vector.broadcast %cst_41 : f32 to vector<8x128xf32>
      %54 = arith.maximumf %52, %53 : vector<8x128xf32>
      %55 = arith.truncf %54 : vector<8x128xf32> to vector<8x128xbf16>
      %c0_42 = arith.constant 0 : index
      %c0_43 = arith.constant 0 : index
      %56 = vector.load %arg13[%c0_42, %c0_43] : memref<128x128xbf16, #tpu.memory_space<vmem>>, vector<128x128xbf16>
      %cst_44 = arith.constant dense<0.000000e+00> : vector<8x128xf32>
      %57 = tpu.matmul %55, %56, %cst_44 {dimension_numbers = #tpu.dot_dimension_numbers<[1], [0], [0], [1], [0, 0, 1, 1], [], []>} : vector<8x128xbf16>, vector<128x128xbf16>, vector<8x128xf32> -> vector<8x128xf32>
      %c0_45 = arith.constant 0 : index
      %c0_46 = arith.constant 0 : index
      %58 = vector.load %arg14[%c0_45, %c0_46] : memref<1x128xf32, #tpu.memory_space<vmem>>, vector<1x128xf32>
      %59 = vector.broadcast %58 : vector<1x128xf32> to vector<8x128xf32>
      %60 = arith.addf %57, %59 : vector<8x128xf32>
      %cst_47 = arith.constant dense<0xFF800000> : vector<8xf32>
      %61 = vector.multi_reduction <maximumf>, %60, %cst_47 [1] : vector<8x128xf32> to vector<8xf32>
      %62 = vector.shape_cast %61 : vector<8xf32> to vector<8x1xf32>
      %63 = vector.broadcast %62 : vector<8x1xf32> to vector<8x128xf32>
      %64 = arith.subf %60, %63 : vector<8x128xf32>
      %65 = math.exp %64 : vector<8x128xf32>
      %cst_48 = arith.constant dense<0.000000e+00> : vector<8xf32>
      %66 = vector.multi_reduction <add>, %65, %cst_48 [1] : vector<8x128xf32> to vector<8xf32>
      %67 = vector.shape_cast %66 : vector<8xf32> to vector<8x1xf32>
      %68 = math.log %67 : vector<8x1xf32>
      %69 = arith.addf %68, %62 : vector<8x1xf32>
      %70 = vector.broadcast %69 : vector<8x1xf32> to vector<8x128xf32>
      %71 = arith.subf %60, %70 : vector<8x128xf32>
      %c0_49 = arith.constant 0 : index
      %c0_50 = arith.constant 0 : index
      %72 = vector.load %arg15[%c0_49, %c0_50] : memref<8x128xf32, #tpu.memory_space<vmem>>, vector<8x128xf32>
      tpu.vector_store %arg15[%c0_49, %c0_50], %71 {strides = array<i32>} : memref<8x128xf32, #tpu.memory_space<vmem>>, vector<8x128xf32>,
    } else {
    }
    return
  }
  func.func @transform_0(%arg0: i32) -> (i32, i32) {
    %c0_i32 = arith.constant 0 : i32
    %c0_i32_0 = arith.constant 0 : i32
    %c0_i32_1 = arith.constant 0 : i32
    return %c0_i32, %c0_i32_0 : i32, i32
  }
  func.func @transform_1(%arg0: i32) -> (i32, i32) {
    %c0_i32 = arith.constant 0 : i32
    %c0_i32_0 = arith.constant 0 : i32
    %c0_i32_1 = arith.constant 0 : i32
    return %c0_i32, %c0_i32_0 : i32, i32
  }
  func.func @transform_2(%arg0: i32) -> (i32, i32, i32) {
    %c0_i32 = arith.constant 0 : i32
    %c0_i32_0 = arith.constant 0 : i32
    %c0_i32_1 = arith.constant 0 : i32
    return %arg0, %c0_i32, %c0_i32_0 : i32, i32, i32
  }
  func.func @transform_3(%arg0: i32) -> (i32, i32, i32) {
    %c0_i32 = arith.constant 0 : i32
    %c0_i32_0 = arith.constant 0 : i32
    %c0_i32_1 = arith.constant 0 : i32
    return %arg0, %c0_i32, %c0_i32_0 : i32, i32, i32
  }
  func.func @transform_4(%arg0: i32) -> (i32, i32, i32) {
    %c0_i32 = arith.constant 0 : i32
    %c0_i32_0 = arith.constant 0 : i32
    %c0_i32_1 = arith.constant 0 : i32
    return %arg0, %c0_i32, %c0_i32_0 : i32, i32, i32
  }
  func.func @transform_5(%arg0: i32) -> (i32, i32, i32) {
    %c0_i32 = arith.constant 0 : i32
    %c0_i32_0 = arith.constant 0 : i32
    %c0_i32_1 = arith.constant 0 : i32
    return %arg0, %c0_i32, %c0_i32_0 : i32, i32, i32
  }
  func.func @transform_6(%arg0: i32) -> (i32, i32, i32) {
    %c0_i32 = arith.constant 0 : i32
    %c0_i32_0 = arith.constant 0 : i32
    %c0_i32_1 = arith.constant 0 : i32
    return %arg0, %c0_i32, %c0_i32_0 : i32, i32, i32
  }
  func.func @transform_7(%arg0: i32) -> (i32, i32, i32) {
    %c0_i32 = arith.constant 0 : i32
    %c0_i32_0 = arith.constant 0 : i32
    %c0_i32_1 = arith.constant 0 : i32
    return %arg0, %c0_i32, %c0_i32_0 : i32, i32, i32
  }
  func.func @transform_8(%arg0: i32) -> (i32, i32) {
    %c0_i32 = arith.constant 0 : i32
    %c0_i32_0 = arith.constant 0 : i32
    %c0_i32_1 = arith.constant 0 : i32
    return %c0_i32, %c0_i32_0 : i32, i32
  }
  func.func @transform_9(%arg0: i32) -> (i32, i32) {
    %c0_i32 = arith.constant 0 : i32
    %c0_i32_0 = arith.constant 0 : i32
    %c0_i32_1 = arith.constant 0 : i32
    return %c0_i32, %c0_i32_0 : i32, i32
  }
  func.func @transform_10(%arg0: i32) -> (i32, i32) {
    %c0_i32 = arith.constant 0 : i32
    %c0_i32_0 = arith.constant 0 : i32
    %c0_i32_1 = arith.constant 0 : i32
    return %c0_i32, %c0_i32_0 : i32, i32
  }
  func.func @transform_11(%arg0: i32) -> (i32, i32) {
    %c0_i32 = arith.constant 0 : i32
    %c0_i32_0 = arith.constant 0 : i32
    %c0_i32_1 = arith.constant 0 : i32
    return %c0_i32, %c0_i32_0 : i32, i32
  }
  func.func @transform_12(%arg0: i32) -> (i32, i32) {
    %c0_i32 = arith.constant 0 : i32
    %c0_i32_0 = arith.constant 0 : i32
    %c0_i32_1 = arith.constant 0 : i32
    return %c0_i32, %c0_i32_0 : i32, i32
  }
  func.func @transform_13(%arg0: i32) -> (i32, i32) {
    %c0_i32 = arith.constant 0 : i32
    %c0_i32_0 = arith.constant 0 : i32
    %c0_i32_1 = arith.constant 0 : i32
    return %c0_i32, %c0_i32_0 : i32, i32
  }
  func.func @transform_14(%arg0: i32) -> (i32, i32) {
    %c0_i32 = arith.constant 0 : i32
    %c0_i32_0 = arith.constant 0 : i32
    %c0_i32_1 = arith.constant 0 : i32
    return %c0_i32, %c0_i32_0 : i32, i32
  }
}

</mosaic_0001>

<bundles_post_ra>
// kernel: pyg_gin0_forward.1
= control target key start
LH: loop header
LB: loop body
LE: loop exit
PB: predicated region body
PF: predicated region fallthrough
CT: control target
= control target key end

     0   :  { %s3770_s0 = inlined_call_operand.hbm [shape: bf16[128,128], index: 0, kind: input, shape index: {}]   ;;  %s3771_s1 = inlined_call_operand.hbm [shape: f32[128,128], index: 1, kind: input, shape index: {}]   ;;  %s3772_s2 = inlined_call_operand.hbm [shape: bf16[3,128,128], index: 2, kind: input, shape index: {}]   ;;  %s3773_s3 = inlined_call_operand.hbm [shape: f32[3,1,128], index: 3, kind: input, shape index: {}]   ;;  %s3774_s4 = inlined_call_operand.hbm [shape: bf16[3,128,128], index: 4, kind: input, shape index: {}]   ;;  %s3775_s5 = inlined_call_operand.hbm [shape: f32[3,1,128], index: 5, kind: input, shape index: {}]   ;;  %s3776_s6 = inlined_call_operand.hbm [shape: f32[3,1,128], index: 6, kind: input, shape index: {}]   ;;  %s3777_s7 = inlined_call_operand.hbm [shape: f32[3,1,128], index: 7, kind: input, shape index: {}]   ;;  %s3778_s8 = inlined_call_operand.hbm [shape: bf16[8,128], index: 8, kind: input, shape index: {}]   ;;  %s3779_s9 = inlined_call_operand.hbm [shape: f32[8,1], index: 9, kind: input, shape index: {}]   ;;  %s3780_s10 = inlined_call_operand.hbm [shape: bf16[128,128], index: 10, kind: input, shape index: {}]   ;;  %s3781_s11 = inlined_call_operand.hbm [shape: f32[1,128], index: 11, kind: input, shape index: {}]   ;;  %s3782_s12 = inlined_call_operand.hbm [shape: bf16[128,128], index: 12, kind: input, shape index: {}]   ;;  %s3783_s13 = inlined_call_operand.hbm [shape: f32[1,128], index: 13, kind: input, shape index: {}]   ;;  %s3784_s14 = inlined_call_operand.hbm [shape: f32[8,128], index: 14, kind: output, shape index: {}]  }
   0x1   :  { %3818 = sst [smem:[#allocation39_spill]] %s3770_s0 }
   0x2   :  { %3819 = sst [smem:[#allocation40_spill]] %s3771_s1 }
   0x3   :  { %3820 = sst [smem:[#allocation41_spill]] %s3772_s2 }
   0x4   :  { %3821 = sst [smem:[#allocation42_spill]] %s3773_s3 }
   0x5   :  { %3822 = sst [smem:[#allocation43_spill]] %s3774_s4 }
   0x6   :  { %3823 = sst [smem:[#allocation44_spill]] %s3777_s7 }
   0x7   :  { %3824 = sst [smem:[#allocation45_spill]] %s3783_s13 }
   0x8   :  { %3825 = sst [smem:[#allocation46_spill]] %s3784_s14 }
   0x9   :  { %19 = vsyncpa [#allocation4], 0 }
   0xa   :  { %20 = vsyncpa [#allocation7], 0 }
   0xb   :  { %21 = vsyncpa [#allocation16], 0 }
   0xc   :  { %22 = vsyncpa [#allocation19], 0 }
   0xd   :  { %23 = vsyncpa [#allocation22], 0 }
   0xe   :  { %24 = vsyncpa [#allocation5], 0  ;;  %s3090_s29 = smov 0   ;;  %s3092_s30 = smov 0  }
   0xf   :  { %s3094_s15 = smov 0   ;;  %s3096_s16 = smov 0  }
  0x10 LB: > { %3826 = sst [smem:[#allocation32_spill]] %s2982_s30  ;;  %s2992_s17 = smov [#allocation3]   ;;  %s2990_s16 = sphi %s3096_s16, %s3882_s16   ;;  %s2986_s15 = sphi %s3094_s15, %s3885_s15   ;;  %s2982_s30 = sphi %s3092_s30, %s3884_s30   ;;  %s2978_s29 = sphi %s3090_s29, %s3883_s29  }
  0x11   : > { %3827 = sst [smem:[#allocation33_spill]] %s2986_s15  ;;  %s392_s18 = sshll.u32 %s2992_s17, 4  ;;  %s393_s18 = int_to_ptr.vmem [resolvable:$true] %s392_s18 }
  0x12   : > { %s3111_s19 = sadd.s32 4294967295, %s2990_s16   ;;  %p1961_p0 = scmp.ge.s32.totalorder %s2990_s16, 1 }
  0x13   : > { %3828 = sst [smem:[#allocation34_spill]] %s3111_s19  ;;  %p3786_p1 = scmp.eq.s32.totalorder %s3111_s19, 0 }
  0x14   : > { %p380_p2 = scmp.lt.s32.totalorder %s2990_s16, 4  ;;  %s3130_s22 = sadd.s32 1, %s2990_s16  }
  0x15   : > { %3832 = sst [smem:[#allocation36_spill]] %s3130_s22  ;;  %s3833_s0 = sld [smem:[#allocation39_spill]] }
  0x16   : > { %p3117_p4 = pnand %p1961_p0, %p380_p2 }
  0x18   : > { %s3829_s20 = scalar_select %p3117_p4, 1, 0 }
  0x19   : > { %p2341_p5 = pneg %p3117_p4 }
  0x1a   : > { %3830 = sst [smem:[#allocation35_spill]] %s3829_s20 }
  0x1b   : > { %p3125_p6 = pnand %p2341_p5, %p3786_p1  ;;  %s2498_s25 = scalar_lea.hbm %s3833_s0, 1024 }
  0x1c   : > { %p2499_p7 = scmp.ne.s32.totalorder %s3833_s0, %s2498_s25  ;;  %p2505_p11 = scmp.lt.u32.totalorder %s2498_s25, %s3833_s0 }
  0x1d   : > { %s3831_s21 = scalar_select %p3125_p6, 1, 0 }
  0x1e   : > { %p3140_p8 = pneg %p3125_p6 }
  0x20   : > { %s3834_s28 = scalar_select %p3140_p8, 1, 0 }
  0x21   : > { %p2501_p9 = pnand %p3140_p8, %p2499_p7 }
  0x23   : > { %p2502_p10 = pneg %p2501_p9 }
  0x25   : > { %p2507_p12 = pnand %p2505_p11, %p2502_p10 }
  0x27   : > { %2510 = shalt.err (!%p2507_p12)
}
  0x28   : > { %s2511_s23 = scalar_lea.vmem %s393_s18, 1024  ;;  %p2519_p5 = scmp.lt.s32.totalorder %s393_s18, %s393_s18 }
  0x29   : > { %p2512_p13 = scmp.ne.s32.totalorder %s393_s18, %s2511_s23  ;;  %p2520_p3 = scmp.lt.s32.totalorder %s2511_s23, %s2511_s23 }
  0x2b   : > { %p2514_p0 = pnand %p2512_p13, %p3140_p8  ;;  %p2521_p1 = por %p2520_p3, %p2519_p5 }
  0x2d   : > { %p2515_p2 = pneg %p2514_p0 }
  0x2f   : > { %p2522_p4 = pnand %p2521_p1, %p2515_p2 }
  0x31   : > { %2525 = shalt.err (!%p2522_p4)
}
  0x32   : > { %s3790_s24 = smov 64   ;;  %s3792_s14 = smov 4  }
  0x33   : > { %2344 = dma.hbm_to_vmem [thread:$0]  (!%p3125_p6), %s3833_s0, 1024, %s393_s18, [#allocation4], %s3790_s24, %s3790_s24, %s3792_s14  }
  0x34   : > { %s76_s27 = ssub.s32 %s2990_s16, %s3130_s22  ;;  %s79_s17 = sadd.s32 1, %s2986_s15 }
  0x35   : > { %p77_p1 = scmp.eq.s32.totalorder %s76_s27, 0  ;;  %p86_p3 = scmp.ne.s32.totalorder %s2986_s15, %s2982_s30 }
  0x36   : > { %p87_p4 = scmp.eq.s32.totalorder %s2990_s16, 0  ;;  %p92_p7 = scmp.ne.s32.totalorder %s2982_s30, %s2978_s29 }
  0x37   : > { %s3168_s23 = scalar_select %p77_p1, %s2986_s15, %s79_s17  }
  0x38   : > { %p88_p9 = por %p87_p4, %p86_p3  ;;  %p3836_p10 = scmp.eq.s32.totalorder %s3111_s19, 0 }
  0x39   : > { %3835 = sst [smem:[#allocation37_spill]] %s3168_s23  ;;  %p2393_p12 = scmp.lt.s32.totalorder %s2990_s16, 3 }
  0x3a   : > { %p3172_p11 = por %p3836_p10, %p92_p7  ;;  %s489_s13 = sand.u32 1, %s2990_s16  }
  0x3b   : > { %s3179_s25 = sand.u32 1, %s2986_s15   ;;  %s3796_s26 = sshll.u32 %s2990_s16, 10 }
  0x3c   : > { %s3837_s20 = scalar_select %p3172_p11, 1, 0 }
  0x3d   : > { %s3795_s18 = sshll.u32 %s3179_s25, 6  ;;  %s3839_s2 = sld [smem:[#allocation41_spill]] }
  0x3e   : > { %3838 = sst [smem:[#allocation38_spill]] %s3837_s20  ;;  %s493_s17 = scalar_lea.vmem [#allocation8], %s3795_s18 }
  0x3f   : > { %s500_s14 = sshll.u32 %s493_s17, 4  ;;  %p3192_p13 = pnand %p2393_p12, %p88_p9  ;;  %s3196_s14 = int_to_ptr.vmem [resolvable:$true] %s500_s14 }
  0x40   : > { %s3199_s23 = sshll.u32 %s2990_s16, 4  ;;  %s3201_s15 = scalar_lea.sflag [#allocation4], %s489_s13 }
  0x41   : > { %s3840_s0 = scalar_select %p3192_p13, 1, 0 }
  0x42   : > { %p3207_p2 = pneg %p3192_p13 }
  0x43   : > { %s3188_s29 = scalar_lea.hbm %s3839_s2, %s3796_s26  ;;  %s2531_s26 = scalar_lea.hbm %s3839_s2, 3072 }
  0x44   : > { %s2526_s24 = scalar_lea.hbm %s3188_s29, 1024  ;;  %p2532_p3 = scmp.lt.u32.totalorder %s3188_s29, %s3839_s2 }
  0x45   : > { %p2527_p0 = scmp.ne.s32.totalorder %s3188_s29, %s2526_s24  ;;  %p2533_p4 = scmp.lt.u32.totalorder %s2531_s26, %s2526_s24 }
  0x46   : > { %s3841_s27 = scalar_select %p3207_p2, 1, 0 }
  0x47   : > { %p2529_p5 = pnand %p3207_p2, %p2527_p0  ;;  %p2534_p7 = por %p2533_p4, %p2532_p3 }
  0x48   : > { %p2535_p9 = scmp.lt.u32.totalorder %s2526_s24, %s3188_s29 }
  0x49   : > { %p2530_p1 = pneg %p2529_p5 }
  0x4a   : > { %p2536_p10 = por %p2535_p9, %p2534_p7 }
  0x4c   : > { %p2537_p12 = pnand %p2536_p10, %p2530_p1 }
  0x4e   : > { %2540 = shalt.err (!%p2537_p12)
}
  0x4f   : > { %s2541_s13 = scalar_lea.vmem %s3196_s14, 1024  ;;  %s2995_s18 = smov [#allocation8]  }
  0x50   : > { %p2542_p0 = scmp.ne.s32.totalorder %s3196_s14, %s2541_s13  ;;  %s2546_s17 = sshll.u32 %s2995_s18, 4  ;;  %s2547_s17 = int_to_ptr.vmem [resolvable:$false] %s2546_s17 }
  0x51   : > { %s2548_s20 = scalar_lea.vmem %s2547_s17, 2048  ;;  %p2549_p6 = scmp.lt.s32.totalorder %s3196_s14, %s2547_s17 }
  0x52   : > { %p2544_p5 = pnand %p2542_p0, %p3207_p2  ;;  %p2550_p8 = scmp.lt.s32.totalorder %s2548_s20, %s2541_s13 }
  0x54   : > { %p2545_p11 = pneg %p2544_p5  ;;  %p2551_p3 = por %p2550_p8, %p2549_p6 }
  0x56   : > { %p2552_p4 = pnand %p2551_p3, %p2545_p11 }
  0x58   : > { %2555 = shalt.err (!%p2552_p4)
}
  0x59   : > { %s3842_s22 = smov 4   ;;  %s3843_s26 = smov 64  }
  0x5a   : > { %2369 = dma.hbm_to_vmem [thread:$0]  (!%p3192_p13), %s3188_s29, 1024, %s3196_s14, %s3201_s15, %s3843_s26, %s3843_s26, %s3842_s22  }
  0x5b   : > { %s3844_s3 = sld [smem:[#allocation42_spill]]  ;;  %s513_s13 = scalar_lea.vmem [#allocation9], %s3179_s25 }
  0x5c   : > { %s520_s20 = sshll.u32 %s513_s13, 4  ;;  %s521_s20 = int_to_ptr.vmem [resolvable:$true] %s520_s20 }
  0x61   : > { %s3238_s17 = scalar_lea.hbm %s3844_s3, %s3199_s23  ;;  %s2561_s14 = scalar_lea.hbm %s3844_s3, 48 }
  0x62   : > { %s2556_s2 = scalar_lea.hbm %s3238_s17, 16  ;;  %p2562_p1 = scmp.lt.u32.totalorder %s3238_s17, %s3844_s3 }
  0x63   : > { %p2557_p6 = scmp.ne.s32.totalorder %s3238_s17, %s2556_s2  ;;  %p2563_p7 = scmp.lt.u32.totalorder %s2561_s14, %s2556_s2 }
  0x64   : > { %p2565_p10 = scmp.lt.u32.totalorder %s2556_s2, %s3238_s17 }
  0x65   : > { %p2559_p8 = pnand %p2557_p6, %p3207_p2  ;;  %p2564_p9 = por %p2563_p7, %p2562_p1 }
  0x67   : > { %p2560_p11 = pneg %p2559_p8  ;;  %p2566_p12 = por %p2565_p10, %p2564_p9 }
  0x69   : > { %p2567_p0 = pnand %p2566_p12, %p2560_p11 }
  0x6b   : > { %2570 = shalt.err (!%p2567_p0)
}
  0x6c   : > { %s2571_s18 = scalar_lea.vmem %s521_s20, 16  ;;  %s2996_s13 = smov [#allocation9]  }
  0x6d   : > { %p2572_p5 = scmp.ne.s32.totalorder %s521_s20, %s2571_s18  ;;  %s2576_s7 = sshll.u32 %s2996_s13, 4  ;;  %s2577_s7 = int_to_ptr.vmem [resolvable:$false] %s2576_s7 }
  0x6e   : > { %s2578_s30 = scalar_lea.vmem %s2577_s7, 32  ;;  %p2579_p6 = scmp.lt.s32.totalorder %s521_s20, %s2577_s7 }
  0x6f   : > { %p2574_p3 = pnand %p2572_p5, %p3207_p2  ;;  %p2580_p8 = scmp.lt.s32.totalorder %s2578_s30, %s2571_s18 }
  0x71   : > { %p2575_p4 = pneg %p2574_p3  ;;  %p2581_p13 = por %p2580_p8, %p2579_p6 }
  0x73   : > { %p2582_p1 = pnand %p2581_p13, %p2575_p4 }
  0x75   : > { %2585 = shalt.err (!%p2582_p1)
}
  0x76   : > { %p3845_p7 = scmp.ne.s32.totalorder %s3840_s0, 0  ;;  %s3846_s2 = sshll.u32 %s2990_s16, 10 }
  0x77   : > { %s3847_s4 = sld [smem:[#allocation43_spill]]  ;;  %s3848_s24 = sshll.u32 %s3179_s25, 6 }
  0x78   : > { %2372 = dma.hbm_to_vmem [thread:$0]  (!%p3845_p7), %s3238_s17, 16, %s521_s20, %s3201_s15  }
  0x79   : > { %s531_s7 = scalar_lea.vmem [#allocation10], %s3848_s24 }
  0x7a   : > { %s538_s18 = sshll.u32 %s531_s7, 4  ;;  %s3268_s18 = int_to_ptr.vmem [resolvable:$true] %s538_s18 }
  0x7d   : > { %s3264_s29 = scalar_lea.hbm %s3847_s4, %s3846_s2  ;;  %s2591_s20 = scalar_lea.hbm %s3847_s4, 3072 }
  0x7e   : > { %s2586_s13 = scalar_lea.hbm %s3264_s29, 1024  ;;  %p2592_p10 = scmp.lt.u32.totalorder %s3264_s29, %s3847_s4 }
  0x7f   : > { %p2587_p13 = scmp.ne.s32.totalorder %s3264_s29, %s2586_s13  ;;  %p2593_p12 = scmp.lt.u32.totalorder %s2591_s20, %s2586_s13 }
  0x80   : > { %p2595_p5 = scmp.lt.u32.totalorder %s2586_s13, %s3264_s29 }
  0x81   : > { %p2589_p11 = pnand %p2587_p13, %p3207_p2  ;;  %p2594_p0 = por %p2593_p12, %p2592_p10 }
  0x83   : > { %p2590_p9 = pneg %p2589_p11  ;;  %p2596_p3 = por %p2595_p5, %p2594_p0 }
  0x85   : > { %p2597_p4 = pnand %p2596_p3, %p2590_p9 }
  0x87   : > { %2600 = shalt.err (!%p2597_p4)
}
  0x88   : > { %s2601_s19 = scalar_lea.vmem %s3268_s18, 1024  ;;  %s2997_s14 = smov [#allocation10]  }
  0x89   : > { %p2602_p6 = scmp.ne.s32.totalorder %s3268_s18, %s2601_s19  ;;  %s2606_s24 = sshll.u32 %s2997_s14, 4  ;;  %s2607_s24 = int_to_ptr.vmem [resolvable:$false] %s2606_s24 }
  0x8a   : > { %s2608_s7 = scalar_lea.vmem %s2607_s24, 2048  ;;  %p2609_p13 = scmp.lt.s32.totalorder %s3268_s18, %s2607_s24 }
  0x8b   : > { %p2604_p8 = pnand %p2602_p6, %p3207_p2  ;;  %p2610_p11 = scmp.lt.s32.totalorder %s2608_s7, %s2601_s19 }
  0x8d   : > { %p2605_p1 = pneg %p2604_p8  ;;  %p2611_p10 = por %p2610_p11, %p2609_p13 }
  0x8f   : > { %p2612_p12 = pnand %p2611_p10, %p2605_p1 }
  0x91   : > { %2615 = shalt.err (!%p2612_p12)
}
  0x92   : > { %2375 = dma.hbm_to_vmem [thread:$0]  (!%p3845_p7), %s3264_s29, 1024, %s3268_s18, %s3201_s15, %s3843_s26, %s3843_s26, %s3842_s22  }
  0x93   : > { %s3299_s17 = scalar_lea.hbm %s3775_s5, %s3199_s23  ;;  %s551_s20 = scalar_lea.vmem [#allocation11], %s3179_s25 }
  0x94   : > { %s558_s30 = sshll.u32 %s551_s20, 4  ;;  %s2616_s2 = scalar_lea.hbm %s3299_s17, 16  ;;  %s559_s30 = int_to_ptr.vmem [resolvable:$true] %s558_s30 }
  0x95   : > { %p2617_p9 = scmp.ne.s32.totalorder %s3299_s17, %s2616_s2  ;;  %s2621_s29 = scalar_lea.hbm %s3775_s5, 48 }
  0x96   : > { %p2622_p3 = scmp.lt.u32.totalorder %s3299_s17, %s3775_s5  ;;  %p2623_p4 = scmp.lt.u32.totalorder %s2621_s29, %s2616_s2 }
  0x97   : > { %p2619_p0 = pnand %p2617_p9, %p3207_p2  ;;  %p2625_p8 = scmp.lt.u32.totalorder %s2616_s2, %s3299_s17 }
  0x98   : > { %p2624_p6 = por %p2623_p4, %p2622_p3 }
  0x99   : > { %p2620_p5 = pneg %p2619_p0 }
  0x9a   : > { %p2626_p1 = por %p2625_p8, %p2624_p6 }
  0x9c   : > { %p2627_p13 = pnand %p2626_p1, %p2620_p5 }
  0x9e   : > { %2630 = shalt.err (!%p2627_p13)
}
  0x9f   : > { %s2631_s7 = scalar_lea.vmem %s559_s30, 16  ;;  %s2998_s13 = smov [#allocation11]  }
  0xa0   : > { %p2632_p11 = scmp.ne.s32.totalorder %s559_s30, %s2631_s7  ;;  %s2636_s16 = sshll.u32 %s2998_s13, 4  ;;  %s2637_s16 = int_to_ptr.vmem [resolvable:$false] %s2636_s16 }
  0xa1   : > { %s2638_s20 = scalar_lea.vmem %s2637_s16, 32  ;;  %p2639_p9 = scmp.lt.s32.totalorder %s559_s30, %s2637_s16 }
  0xa2   : > { %p2634_p10 = pnand %p2632_p11, %p3207_p2  ;;  %p2640_p0 = scmp.lt.s32.totalorder %s2638_s20, %s2631_s7 }
  0xa4   : > { %p2635_p12 = pneg %p2634_p10  ;;  %p2641_p7 = por %p2640_p0, %p2639_p9 }
  0xa6   : > { %p2642_p3 = pnand %p2641_p7, %p2635_p12 }
  0xa8   : > { %2645 = shalt.err (!%p2642_p3)
}
  0xa9   : > { %p3849_p4 = scmp.ne.s32.totalorder %s3840_s0, 0  ;;  %s2999_s2 = smov [#allocation6]  }
  0xaa   : > { %s405_s19 = sshll.u32 %s2999_s2, 4  ;;  %s3850_s1 = sld [smem:[#allocation40_spill]]  ;;  %s406_s19 = int_to_ptr.vmem [resolvable:$true] %s405_s19 }
  0xab   : > { %2378 = dma.hbm_to_vmem [thread:$0]  (!%p3849_p4), %s3299_s17, 16, %s559_s30, %s3201_s15  }
  0xac   : > { %p3851_p6 = scmp.ne.s32.totalorder %s3834_s28, 0 }
  0xb0   : > { %s2646_s18 = scalar_lea.hbm %s3850_s1, 2048 }
  0xb1   : > { %p2647_p5 = scmp.ne.s32.totalorder %s3850_s1, %s2646_s18  ;;  %p2653_p1 = scmp.lt.u32.totalorder %s2646_s18, %s3850_s1 }
  0xb3   : > { %p2649_p7 = pnand %p2647_p5, %p3851_p6 }
  0xb5   : > { %p2650_p8 = pneg %p2649_p7 }
  0xb7   : > { %p2655_p13 = pnand %p2653_p1, %p2650_p8 }
  0xb9   : > { %2658 = shalt.err (!%p2655_p13)
}
  0xba   : > { %s2659_s17 = scalar_lea.vmem %s406_s19, 2048  ;;  %p2667_p9 = scmp.lt.s32.totalorder %s406_s19, %s406_s19 }
  0xbb   : > { %p2660_p11 = scmp.ne.s32.totalorder %s406_s19, %s2659_s17  ;;  %p2668_p0 = scmp.lt.s32.totalorder %s2659_s17, %s2659_s17 }
  0xbd   : > { %p2662_p10 = pnand %p2660_p11, %p3851_p6  ;;  %p2669_p3 = por %p2668_p0, %p2667_p9 }
  0xbf   : > { %p2663_p12 = pneg %p2662_p10 }
  0xc1   : > { %p2670_p4 = pnand %p2669_p3, %p2663_p12 }
  0xc3   : > { %2673 = shalt.err (!%p2670_p4)
}
  0xc4   : > { %s3000_s30 = smov 128   ;;  %s3001_s20 = smov 8  }
  0xc5   : > { %p3852_p5 = scmp.ne.s32.totalorder %s3831_s21, 0  ;;  %s3002_s29 = smov [#allocation15]  }
  0xc6   : > { %s430_s18 = sshll.u32 %s3002_s29, 4  ;;  %s3003_s24 = smov [#allocation18]   ;;  %s431_s18 = int_to_ptr.vmem [resolvable:$true] %s430_s18 }
  0xc7   : > { %2347 = dma.hbm_to_vmem [thread:$0]  (!%p3852_p5), %s3850_s1, 2048, %s406_s19, [#allocation7], %s3000_s30, %s3000_s30, %s3001_s20  }
  0xc8   : > { %s454_s13 = sshll.u32 %s3003_s24, 4  ;;  %s2674_s17 = scalar_lea.hbm %s3779_s9, 128  ;;  %s3338_s13 = int_to_ptr.vmem [resolvable:$true] %s454_s13 }
  0xc9   : > { %p2675_p4 = scmp.ne.s32.totalorder %s3779_s9, %s2674_s17  ;;  %p2681_p1 = scmp.lt.u32.totalorder %s2674_s17, %s3779_s9 }
  0xcb   : > { %p2677_p7 = pnand %p2675_p4, %p3851_p6 }
  0xcd   : > { %p2678_p8 = pneg %p2677_p7 }
  0xcf   : > { %p2683_p13 = pnand %p2681_p1, %p2678_p8 }
  0xd1   : > { %2686 = shalt.err (!%p2683_p13)
}
  0xd2   : > { %s2687_s30 = scalar_lea.vmem %s431_s18, 128  ;;  %p2695_p9 = scmp.lt.s32.totalorder %s431_s18, %s431_s18 }
  0xd3   : > { %p2688_p11 = scmp.ne.s32.totalorder %s431_s18, %s2687_s30  ;;  %p2696_p0 = scmp.lt.s32.totalorder %s2687_s30, %s2687_s30 }
  0xd5   : > { %p2690_p10 = pnand %p2688_p11, %p3851_p6  ;;  %p2697_p3 = por %p2696_p0, %p2695_p9 }
  0xd7   : > { %p2691_p12 = pneg %p2690_p10 }
  0xd9   : > { %p2698_p2 = pnand %p2697_p3, %p2691_p12 }
  0xdb   : > { %2701 = shalt.err (!%p2698_p2)
}
  0xdc   : > { %2353 = dma.hbm_to_vmem [thread:$0]  (!%p3852_p5), %s3779_s9, 128, %s431_s18, [#allocation16]  }
  0xdd   : > { %s2702_s29 = scalar_lea.hbm %s3781_s11, 16 }
  0xde   : > { %p2703_p4 = scmp.ne.s32.totalorder %s3781_s11, %s2702_s29  ;;  %p2709_p2 = scmp.lt.u32.totalorder %s2702_s29, %s3781_s11 }
  0xe0   : > { %p2705_p7 = pnand %p2703_p4, %p3851_p6 }
  0xe2   : > { %p2706_p8 = pneg %p2705_p7 }
  0xe4   : > { %p2711_p1 = pnand %p2709_p2, %p2706_p8 }
  0xe6   : > { %2714 = shalt.err (!%p2711_p1)
}
  0xe7   : > { %s2715_s18 = scalar_lea.vmem %s3338_s13, 16  ;;  %s2722_s2 = scalar_lea.vmem %s3338_s13, 32 }
  0xe8   : > { %p2716_p13 = scmp.ne.s32.totalorder %s3338_s13, %s2715_s18  ;;  %p2723_p12 = scmp.lt.s32.totalorder %s3338_s13, %s3338_s13 }
  0xe9   : > { %p2724_p9 = scmp.lt.s32.totalorder %s2722_s2, %s2715_s18 }
  0xea   : > { %p2718_p11 = pnand %p2716_p13, %p3851_p6 }
  0xeb   : > { %p2725_p0 = por %p2724_p9, %p2723_p12 }
  0xec   : > { %p2719_p10 = pneg %p2718_p11 }
  0xee   : > { %p2726_p3 = pnand %p2725_p0, %p2719_p10 }
  0xf0   : > { %2729 = shalt.err (!%p2726_p3)
}
  0xf1   : > { %2359 = dma.hbm_to_vmem [thread:$0]  (!%p3852_p5), %s3781_s11, 16, %s3338_s13, [#allocation19]  }
  0xf2   : > { %s3386_s20 = scalar_lea.hbm %s3776_s6, %s3199_s23  ;;  %s568_s14 = scalar_lea.vmem [#allocation12], %s3179_s25 }
  0xf3   : > { %s575_s29 = sshll.u32 %s568_s14, 4  ;;  %s3004_s24 = smov [#allocation14]   ;;  %s3389_s29 = int_to_ptr.vmem [resolvable:$true] %s575_s29 }
  0xf4   : > { %s419_s7 = sshll.u32 %s3004_s24, 4  ;;  %s2730_s16 = scalar_lea.hbm %s3386_s20, 16  ;;  %s420_s7 = int_to_ptr.vmem [resolvable:$true] %s419_s7 }
  0xf5   : > { %p2731_p4 = scmp.ne.s32.totalorder %s3386_s20, %s2730_s16  ;;  %p3853_p7 = scmp.ne.s32.totalorder %s3841_s27, 0 }
  0xf6   : > { %s2735_s18 = scalar_lea.hbm %s3776_s6, 48  ;;  %p2736_p1 = scmp.lt.u32.totalorder %s3386_s20, %s3776_s6 }
  0xf7   : > { %p2733_p8 = pnand %p2731_p4, %p3853_p7  ;;  %p2737_p13 = scmp.lt.u32.totalorder %s2735_s18, %s2730_s16 }
  0xf8   : > { %p2739_p10 = scmp.lt.u32.totalorder %s2730_s16, %s3386_s20 }
  0xf9   : > { %p2734_p2 = pneg %p2733_p8  ;;  %p2738_p11 = por %p2737_p13, %p2736_p1 }
  0xfb   : > { %p2740_p12 = por %p2739_p10, %p2738_p11 }
  0xfd   : > { %p2741_p9 = pnand %p2740_p12, %p2734_p2 }
  0xff   : > { %2744 = shalt.err (!%p2741_p9)
}
 0x100   : > { %s2745_s30 = scalar_lea.vmem %s3389_s29, 16  ;;  %s3005_s3 = smov [#allocation12]  }
 0x101   : > { %p2746_p0 = scmp.ne.s32.totalorder %s3389_s29, %s2745_s30  ;;  %s2750_s4 = sshll.u32 %s3005_s3, 4  ;;  %s2751_s4 = int_to_ptr.vmem [resolvable:$false] %s2750_s4 }
 0x102   : > { %s2752_s14 = scalar_lea.vmem %s2751_s4, 32  ;;  %p2753_p8 = scmp.lt.s32.totalorder %s3389_s29, %s2751_s4 }
 0x103   : > { %p2748_p3 = pnand %p2746_p0, %p3853_p7  ;;  %p2754_p5 = scmp.lt.s32.totalorder %s2752_s14, %s2745_s30 }
 0x105   : > { %p2749_p4 = pneg %p2748_p3  ;;  %p2755_p1 = por %p2754_p5, %p2753_p8 }
 0x107   : > { %p2756_p13 = pnand %p2755_p1, %p2749_p4 }
 0x109   : > { %2759 = shalt.err (!%p2756_p13)
}
 0x10a   : > { %p3854_p2 = scmp.ne.s32.totalorder %s3840_s0, 0  ;;  %s2760_s13 = scalar_lea.hbm %s3778_s8, 64 }
 0x10b   : > { %p2761_p11 = scmp.ne.s32.totalorder %s3778_s8, %s2760_s13  ;;  %p2767_p12 = scmp.lt.u32.totalorder %s2760_s13, %s3778_s8 }
 0x10c   : > { %2381 = dma.hbm_to_vmem [thread:$0]  (!%p3854_p2), %s3386_s20, 16, %s3389_s29, %s3201_s15  }
 0x10d   : > { %p2763_p5 = pnand %p2761_p11, %p3851_p6 }
 0x10f   : > { %p2764_p10 = pneg %p2763_p5 }
 0x111   : > { %p2769_p9 = pnand %p2767_p12, %p2764_p10 }
 0x113   : > { %2772 = shalt.err (!%p2769_p9)
}
 0x114   : > { %s2773_s30 = scalar_lea.vmem %s420_s7, 64  ;;  %p2781_p8 = scmp.lt.s32.totalorder %s420_s7, %s420_s7 }
 0x115   : > { %p2774_p0 = scmp.ne.s32.totalorder %s420_s7, %s2773_s30  ;;  %p2782_p1 = scmp.lt.s32.totalorder %s2773_s30, %s2773_s30 }
 0x117   : > { %p2776_p3 = pnand %p2774_p0, %p3851_p6  ;;  %p2783_p13 = por %p2782_p1, %p2781_p8 }
 0x119   : > { %p2777_p4 = pneg %p2776_p3 }
 0x11b   : > { %p2784_p2 = pnand %p2783_p13, %p2777_p4 }
 0x11d   : > { %2787 = shalt.err (!%p2784_p2)
}
 0x11e   : > { %p3855_p11 = scmp.ne.s32.totalorder %s3831_s21, 0  ;;  %s3006_s3 = smov [#allocation17]  }
 0x11f   : > { %s440_s4 = sshll.u32 %s3006_s3, 4  ;;  %s3007_s14 = smov [#allocation20]   ;;  %s441_s4 = int_to_ptr.vmem [resolvable:$true] %s440_s4 }
 0x120   : > { %2350 = dma.hbm_to_vmem [thread:$0]  (!%p3855_p11), %s3778_s8, 64, %s420_s7, [#allocation7]  }
 0x121   : > { %s464_s24 = sshll.u32 %s3007_s14, 4  ;;  %s2788_s17 = scalar_lea.hbm %s3780_s10, 1024  ;;  %s465_s24 = int_to_ptr.vmem [resolvable:$true] %s464_s24 }
 0x122   : > { %p2789_p2 = scmp.ne.s32.totalorder %s3780_s10, %s2788_s17  ;;  %p2795_p12 = scmp.lt.u32.totalorder %s2788_s17, %s3780_s10 }
 0x124   : > { %p2791_p5 = pnand %p2789_p2, %p3851_p6 }
 0x126   : > { %p2792_p10 = pneg %p2791_p5 }
 0x128   : > { %p2797_p9 = pnand %p2795_p12, %p2792_p10 }
 0x12a   : > { %2800 = shalt.err (!%p2797_p9)
}
 0x12b   : > { %s2801_s7 = scalar_lea.vmem %s441_s4, 1024  ;;  %p2809_p8 = scmp.lt.s32.totalorder %s441_s4, %s441_s4 }
 0x12c   : > { %p2802_p0 = scmp.ne.s32.totalorder %s441_s4, %s2801_s7  ;;  %p2810_p1 = scmp.lt.s32.totalorder %s2801_s7, %s2801_s7 }
 0x12e   : > { %p2804_p3 = pnand %p2802_p0, %p3851_p6  ;;  %p2811_p13 = por %p2810_p1, %p2809_p8 }
 0x130   : > { %p2805_p4 = pneg %p2804_p3 }
 0x132   : > { %p2812_p7 = pnand %p2811_p13, %p2805_p4 }
 0x134   : > { %2815 = shalt.err (!%p2812_p7)
}
 0x135   : > { %2356 = dma.hbm_to_vmem [thread:$0]  (!%p3855_p11), %s3780_s10, 1024, %s441_s4, [#allocation16], %s3843_s26, %s3843_s26, %s3842_s22  }
 0x136   : > { %s2816_s16 = scalar_lea.hbm %s3782_s12, 1024 }
 0x137   : > { %p2817_p2 = scmp.ne.s32.totalorder %s3782_s12, %s2816_s16  ;;  %p2823_p10 = scmp.lt.u32.totalorder %s2816_s16, %s3782_s12 }
 0x139   : > { %p2819_p7 = pnand %p2817_p2, %p3851_p6 }
 0x13b   : > { %p2820_p5 = pneg %p2819_p7 }
 0x13d   : > { %p2825_p12 = pnand %p2823_p10, %p2820_p5 }
 0x13f   : > { %2828 = shalt.err (!%p2825_p12)
}
 0x140   : > { %s2829_s19 = scalar_lea.vmem %s465_s24, 1024  ;;  %p2837_p4 = scmp.lt.s32.totalorder %s465_s24, %s465_s24 }
 0x141   : > { %p2830_p9 = scmp.ne.s32.totalorder %s465_s24, %s2829_s19  ;;  %p2838_p8 = scmp.lt.s32.totalorder %s2829_s19, %s2829_s19 }
 0x143   : > { %p2832_p0 = pnand %p2830_p9, %p3851_p6  ;;  %p2839_p1 = por %p2838_p8, %p2837_p4 }
 0x145   : > { %p2833_p3 = pneg %p2832_p0 }
 0x147   : > { %p2840_p13 = pnand %p2839_p1, %p2833_p3 }
 0x149   : > { %2843 = shalt.err (!%p2840_p13)
}
 0x14a   : > { %2362 = dma.hbm_to_vmem [thread:$0]  (!%p3855_p11), %s3782_s12, 1024, %s465_s24, [#allocation19], %s3843_s26, %s3843_s26, %s3842_s22  }
 0x14b   : > { %s3008_s7 = smov [#allocation21]   ;;  %s3856_s14 = sld [smem:[#allocation44_spill]] }
 0x14c   : > { %s478_s20 = sshll.u32 %s3008_s7, 4  ;;  %s3857_s18 = sld [smem:[#allocation45_spill]]  ;;  %s479_s20 = int_to_ptr.vmem [resolvable:$true] %s478_s20 }
 0x151   : > { %s3477_s16 = scalar_lea.hbm %s3856_s14, %s3199_s23 }
 0x152   : > { %s2844_s2 = scalar_lea.hbm %s3857_s18, 16 }
 0x153   : > { %p2845_p2 = scmp.ne.s32.totalorder %s3857_s18, %s2844_s2  ;;  %p2851_p10 = scmp.lt.u32.totalorder %s2844_s2, %s3857_s18 }
 0x155   : > { %p2847_p7 = pnand %p2845_p2, %p3851_p6 }
 0x157   : > { %p2848_p5 = pneg %p2847_p7 }
 0x159   : > { %p2853_p12 = pnand %p2851_p10, %p2848_p5 }
 0x15b   : > { %2856 = shalt.err (!%p2853_p12)
}
 0x15c   : > { %s2857_s24 = scalar_lea.vmem %s479_s20, 16  ;;  %s2864_s23 = scalar_lea.vmem %s479_s20, 32 }
 0x15d   : > { %p2858_p9 = scmp.ne.s32.totalorder %s479_s20, %s2857_s24  ;;  %p2865_p4 = scmp.lt.s32.totalorder %s479_s20, %s479_s20 }
 0x15e   : > { %p2866_p8 = scmp.lt.s32.totalorder %s2864_s23, %s2857_s24 }
 0x15f   : > { %p2860_p0 = pnand %p2858_p9, %p3851_p6 }
 0x160   : > { %p2867_p1 = por %p2866_p8, %p2865_p4 }
 0x161   : > { %p2861_p3 = pneg %p2860_p0 }
 0x163   : > { %p2868_p13 = pnand %p2867_p1, %p2861_p3 }
 0x165   : > { %2871 = shalt.err (!%p2868_p13)
}
 0x166   : > { %2365 = dma.hbm_to_vmem [thread:$0]  (!%p3855_p11), %s3857_s18, 16, %s479_s20, [#allocation22]  }
 0x167   : > { %s585_s28 = scalar_lea.vmem [#allocation13], %s3179_s25  ;;  %s2872_s7 = scalar_lea.hbm %s3477_s16, 16 }
 0x168   : > { %s592_s30 = sshll.u32 %s585_s28, 4  ;;  %p2873_p6 = scmp.ne.s32.totalorder %s3477_s16, %s2872_s7  ;;  %s593_s30 = int_to_ptr.vmem [resolvable:$true] %s592_s30 }
 0x169   : > { %p3858_p2 = scmp.ne.s32.totalorder %s3841_s27, 0  ;;  %s2877_s3 = scalar_lea.hbm %s3856_s14, 48 }
 0x16a   : > { %p2878_p10 = scmp.lt.u32.totalorder %s3477_s16, %s3856_s14  ;;  %p2879_p12 = scmp.lt.u32.totalorder %s2877_s3, %s2872_s7 }
 0x16b   : > { %p2875_p7 = pnand %p2873_p6, %p3858_p2  ;;  %p2881_p0 = scmp.lt.u32.totalorder %s2872_s7, %s3477_s16 }
 0x16c   : > { %p2880_p9 = por %p2879_p12, %p2878_p10 }
 0x16d   : > { %p2876_p5 = pneg %p2875_p7 }
 0x16e   : > { %p2882_p11 = por %p2881_p0, %p2880_p9 }
 0x170   : > { %p2883_p3 = pnand %p2882_p11, %p2876_p5 }
 0x172   : > { %2886 = shalt.err (!%p2883_p3)
}
 0x173   : > { %s2887_s25 = scalar_lea.vmem %s593_s30, 16  ;;  %s3009_s20 = smov [#allocation13]  }
 0x174   : > { %p2888_p4 = scmp.ne.s32.totalorder %s593_s30, %s2887_s25  ;;  %s2892_s2 = sshll.u32 %s3009_s20, 4  ;;  %s2893_s2 = int_to_ptr.vmem [resolvable:$false] %s2892_s2 }
 0x175   : > { %s2894_s19 = scalar_lea.vmem %s2893_s2, 32  ;;  %p2895_p13 = scmp.lt.s32.totalorder %s593_s30, %s2893_s2 }
 0x176   : > { %p2890_p8 = pnand %p2888_p4, %p3858_p2  ;;  %p2896_p6 = scmp.lt.s32.totalorder %s2894_s19, %s2887_s25 }
 0x178   : > { %p2891_p1 = pneg %p2890_p8  ;;  %p2897_p7 = por %p2896_p6, %p2895_p13 }
 0x17a   : > { %p2898_p10 = pnand %p2897_p7, %p2891_p1 }
 0x17c   : > { %2901 = shalt.err (!%p2898_p10)
}
 0x17d   : > { %p3859_p12 = scmp.ne.s32.totalorder %s3840_s0, 0  ;;  %s3860_s22 = sld [smem:[#allocation35_spill]] }
 0x17f   : > { %2384 = dma.hbm_to_vmem [thread:$0]  (!%p3859_p12), %s3477_s16, 16, %s593_s30, %s3201_s15  }
 0x183   : > { %p3861_p5 = scmp.ne.s32.totalorder %s3860_s22, 0 }
 0x184   : > { %s3862_s27 = sld [smem:[#allocation34_spill]] (!%p3861_p5) }
 0x185   : > { %601 = sbr.rel (%p3861_p5) target bundleno = 2185 (0x889), region = 76 }
 0x18a   : > { %p3863_p2 = scmp.eq.s32.totalorder (!%p3861_p5), %s3862_s27, 0 }
 0x18c   : > { %2945 = dma.done.wait (%p3863_p2), [#allocation4], 1024   ;;  %p3864_p9 = pmov %p3863_p2 }
 0x18d   : > { %p3865_p0 = pmov %p3863_p2 }
 0x18e   : > { %2947 = vsyncadd (%p3864_p9), [#allocation4], 4294966272 }
 0x18f   : > { %2949 = dma.done.wait (%p3865_p0), [#allocation7], 2048   ;;  %p3866_p11 = pmov %p3865_p0 }
 0x190   : > { %s3867_s0 = sld [smem:[#allocation32_spill]]  ;;  %s3868_s26 = sld [smem:[#allocation38_spill]] }
 0x191   : > { %2951 = vsyncadd (%p3866_p11), [#allocation7], 4294965248  ;;  %s611_s24 = sand.u32 1, %s3862_s27  }
 0x192   : > { %s612_s23 = scalar_lea.sflag [#allocation4], %s611_s24 }
 0x196   : > { %s3528_s15 = sand.u32 1, %s3867_s0   ;;  %p3869_p3 = scmp.ne.s32.totalorder %s3868_s26, 0 }
 0x197   : > { %s1984_s16 = sshll.u32 %s3528_s15, 6 }
 0x198   : > { %s3531_s1 = scalar_lea.vmem [#allocation8], %s1984_s16 }
 0x199   : > { %2953 = dma.done.wait (%p3869_p3), %s612_s23, 2112  }
 0x19a   : > { %2955 = vsyncadd (%p3869_p3), %s612_s23, 4294965184  ;;  %s623_s4 = scalar_lea.vmem [#allocation9], %s3528_s15  ;;  %s3538_s28 = scalar_lea.vmem [#allocation10], %s1984_s16 }
 0x19b   : > { %s640_s30 = scalar_lea.vmem [#allocation11], %s3528_s15  ;;  %s648_s7 = scalar_lea.vmem [#allocation12], %s3528_s15 }
 0x19c   : > { %s656_s29 = scalar_lea.vmem [#allocation13], %s3528_s15  ;;  %p3870_p4 = pmov %p3865_p0 }
 0x19d   : > { %p3871_p8 = pmov %p3865_p0 }
 0x19e   : > { %2957 = dma.done.wait (%p3870_p4), [#allocation7], 64  }
 0x19f   : > { %2959 = vsyncadd (%p3871_p8), [#allocation7], 4294967232  ;;  %p3872_p1 = pmov %p3865_p0 }
 0x1a0   : > { %p3873_p13 = pmov %p3865_p0 }
 0x1a1   : > { %2961 = dma.done.wait (%p3872_p1), [#allocation16], 1152  }
 0x1a2   : > { %2963 = vsyncadd (%p3873_p13), [#allocation16], 4294966144  ;;  %p3874_p6 = pmov %p3865_p0 }
 0x1a3   : > { %p3875_p7 = pmov %p3865_p0 }
 0x1a4   : > { %2965 = dma.done.wait (%p3874_p6), [#allocation19], 1040  }
 0x1a5   : > { %2967 = vsyncadd (%p3875_p7), [#allocation19], 4294966256  ;;  %p3876_p10 = pmov %p3865_p0 }
 0x1a6   : > { %p3877_p12 = pmov %p3865_p0 }
 0x1a7   : > { %2969 = dma.done.wait (%p3876_p10), [#allocation22], 16  }
 0x1a8   : > { %2971 = vsyncadd (%p3877_p12), [#allocation22], 4294967280  ;;  %p3878_p5 = scmp.ne.s32.totalorder %s3862_s27, 0 }
 0x1a9   : > { %v746_v0 = vld [vmem:[#allocation6] sm:$0xff] (!%p3878_p5)  ;;  %v747_v1 = vld [vmem:[#allocation6 + $0x8] sm:$0xff] (!%p3878_p5)  ;;  %v748_v2 = vld [vmem:[#allocation6 + $0x10] sm:$0xff] (!%p3878_p5)  ;;  %v3010_v6 = vmov (!%p3878_p5), 0.0  }
 0x1aa   : > { %745 = sbr.rel (%p3878_p5) target bundleno = 435 (0x1b3), region = 136  ;;  %762 = vst [vmem:[#allocation2] sm:$0xff] (!%p3878_p5), %v746_v0  ;;  %763 = vst [vmem:[#allocation2 + $0x8] sm:$0xff] (!%p3878_p5), %v747_v1  ;;  %v749_v3 = vld [vmem:[#allocation6 + $0x18] sm:$0xff] (!%p3878_p5)  ;;  %v750_v4 = vld [vmem:[#allocation6 + $0x20] sm:$0xff] (!%p3878_p5) }
 0x1ab   : > { %764 = vst [vmem:[#allocation2 + $0x10] sm:$0xff] (!%p3878_p5), %v748_v2  ;;  %v751_v5 = vld [vmem:[#allocation6 + $0x28] sm:$0xff] (!%p3878_p5)  ;;  %778 = vst [vmem:[#allocation23] sm:$0xff] (!%p3878_p5), %v3010_v6  ;;  %v752_v7 = vld [vmem:[#allocation6 + $0x30] sm:$0xff] (!%p3878_p5) }
 0x1ac   : > { %765 = vst [vmem:[#allocation2 + $0x18] sm:$0xff] (!%p3878_p5), %v749_v3  ;;  %766 = vst [vmem:[#allocation2 + $0x20] sm:$0xff] (!%p3878_p5), %v750_v4  ;;  %v753_v8 = vld [vmem:[#allocation6 + $0x38] sm:$0xff] (!%p3878_p5)  ;;  %v754_v9 = vld [vmem:[#allocation6 + $0x40] sm:$0xff] (!%p3878_p5) }
 0x1ad   : > { %767 = vst [vmem:[#allocation2 + $0x28] sm:$0xff] (!%p3878_p5), %v751_v5  ;;  %768 = vst [vmem:[#allocation2 + $0x30] sm:$0xff] (!%p3878_p5), %v752_v7  ;;  %v755_v10 = vld [vmem:[#allocation6 + $0x48] sm:$0xff] (!%p3878_p5)  ;;  %v756_v11 = vld [vmem:[#allocation6 + $0x50] sm:$0xff] (!%p3878_p5) }
 0x1ae   : > { %769 = vst [vmem:[#allocation2 + $0x38] sm:$0xff] (!%p3878_p5), %v753_v8  ;;  %770 = vst [vmem:[#allocation2 + $0x40] sm:$0xff] (!%p3878_p5), %v754_v9  ;;  %v757_v12 = vld [vmem:[#allocation6 + $0x58] sm:$0xff] (!%p3878_p5)  ;;  %v758_v13 = vld [vmem:[#allocation6 + $0x60] sm:$0xff] (!%p3878_p5) }
 0x1af   : > { %771 = vst [vmem:[#allocation2 + $0x48] sm:$0xff] (!%p3878_p5), %v755_v10  ;;  %772 = vst [vmem:[#allocation2 + $0x50] sm:$0xff] (!%p3878_p5), %v756_v11  ;;  %v759_v14 = vld [vmem:[#allocation6 + $0x68] sm:$0xff] (!%p3878_p5)  ;;  %v760_v15 = vld [vmem:[#allocation6 + $0x70] sm:$0xff] (!%p3878_p5) }
 0x1b0   : > { %773 = vst [vmem:[#allocation2 + $0x58] sm:$0xff] (!%p3878_p5), %v757_v12  ;;  %774 = vst [vmem:[#allocation2 + $0x60] sm:$0xff] (!%p3878_p5), %v758_v13  ;;  %v761_v16 = vld [vmem:[#allocation6 + $0x78] sm:$0xff] (!%p3878_p5) }
 0x1b1   : > { %775 = vst [vmem:[#allocation2 + $0x68] sm:$0xff] %v759_v14  ;;  %776 = vst [vmem:[#allocation2 + $0x70] sm:$0xff] %v760_v15 }
 0x1b2   : > { %777 = vst [vmem:[#allocation2 + $0x78] sm:$0xff] %v761_v16 }
 0x1b3 PF: > { %v3561_v17 = vld [vmem:[#allocation2] sm:$0xff]  ;;  %v3563_v18 = vld [vmem:[#allocation2 + $0x8] sm:$0xff]  ;;  %v2463_v40 = vld [vmem:[%s3531_s1 + $0x10] sm:$0xff]   ;;  %s3879_s21 = sld [smem:[#allocation34_spill]] }
 0x1b4   : > { %v3565_v19 = vld [vmem:[#allocation2 + $0x10] sm:$0xff]  ;;  %v811_v20 = vpack.c.bf16 %v3563_v18, %v3561_v17  ;;  %v2453_v28 = vld [vmem:[#allocation3] sm:$0xff]   ;;  %v2462_v36 = vld [vmem:[%s3531_s1 + $0x8] sm:$0xff]  }
 0x1b5   : > { %v3569_v21 = vld [vmem:[#allocation2 + $0x18] sm:$0xff]  ;;  %v3573_v23 = vld [vmem:[#allocation2 + $0x20] sm:$0xff]  ;;  %2137 = vmatprep.mubr.bf16.mxu0 %v2453_v28  ;;  %v2466_v47 = vld [vmem:[%s3531_s1 + $0x28] sm:$0xff]  }
 0x1b6   : > { %v812_v22 = vpack.c.bf16 %v3569_v21, %v3565_v19  ;;  %v3575_v24 = vld [vmem:[#allocation2 + $0x28] sm:$0xff]  ;;  %2121 = vmatprep.subr.bf16.mxu0 %v811_v20  ;;  %v3577_v25 = vld [vmem:[#allocation2 + $0x30] sm:$0xff]  ;;  %v2461_v35 = vld [vmem:[%s3531_s1] sm:$0xff]  }
 0x1b7   : > { %2122 = vmatpush3.bf16.msra.mxu0 %v811_v20  ;;  %v813_v26 = vpack.c.bf16 %v3575_v24, %v3573_v23  ;;  %v3581_v27 = vld [vmem:[#allocation2 + $0x38] sm:$0xff]  ;;  %v3585_v30 = vld [vmem:[#allocation2 + $0x40] sm:$0xff]  ;;  %2153 = vmatprep.subr.bf16.mxu1 %v2461_v35  ;;  %v2454_v48 = vld [vmem:[#allocation3 + $0x8] sm:$0xff]  }
 0x1b8   : > { %2123 = vmatprep.subr.bf16.mxu0 %v812_v22  ;;  %v814_v29 = vpack.c.bf16 %v3581_v27, %v3577_v25  ;;  %v3587_v31 = vld [vmem:[#allocation2 + $0x48] sm:$0xff]  ;;  %v3589_v32 = vld [vmem:[#allocation2 + $0x50] sm:$0xff]  ;;  %2154 = vmatpush3.bf16.msra.mxu1 %v2461_v35  ;;  %v2464_v43 = vld [vmem:[%s3531_s1 + $0x18] sm:$0xff]  }
 0x1b9   : > { %v815_v33 = vpack.c.bf16 %v3587_v31, %v3585_v30  ;;  %v3593_v34 = vld [vmem:[#allocation2 + $0x58] sm:$0xff]  ;;  %v3597_v37 = vld [vmem:[#allocation2 + $0x60] sm:$0xff]  ;;  %2155 = vmatprep.subr.bf16.mxu1 %v2462_v36  ;;  %v2455_v49 = vld [vmem:[#allocation3 + $0x10] sm:$0xff]   ;;  %p2021_p2 = scmp.ne.s32.totalorder %s3879_s21, 2 }
 0x1ba   : > { %v816_v38 = vpack.c.bf16 %v3593_v34, %v3589_v32  ;;  %v3601_v39 = vld [vmem:[#allocation2 + $0x68] sm:$0xff]  ;;  %v3604_v41 = vld [vmem:[#allocation2 + $0x70] sm:$0xff]  ;;  %v3606_v42 = vld [vmem:[#allocation2 + $0x78] sm:$0xff]  ;;  %vm3012_vm0 = vmmov (!%p2021_p2), 0  }
 0x1bb   : > { %2124 = vmatpush3.bf16.msra.mxu0 %v812_v22  ;;  %v817_v44 = vpack.c.bf16 %v3601_v39, %v3597_v37  ;;  %v818_v45 = vpack.c.bf16 %v3606_v42, %v3604_v41  ;;  %v2465_v46 = vld [vmem:[%s3531_s1 + $0x20] sm:$0xff]   ;;  %v2456_v50 = vld [vmem:[#allocation3 + $0x18] sm:$0xff]   ;;  %v2458_v52 = vld [vmem:[#allocation3 + $0x28] sm:$0xff]  }
 0x1bc   : > { %2125 = vmatprep.subr.bf16.mxu0 %v813_v26  ;;  %2156 = vmatpush3.bf16.msra.mxu1 %v2462_v36  ;;  %v2457_v51 = vld [vmem:[#allocation3 + $0x20] sm:$0xff]   ;;  %v2459_v53 = vld [vmem:[#allocation3 + $0x30] sm:$0xff]   ;;  %v2460_v54 = vld [vmem:[#allocation3 + $0x38] sm:$0xff]  }
 0x1bd   : > { %2157 = vmatprep.subr.bf16.mxu1 %v2463_v40  ;;  %v2467_v55 = vld [vmem:[%s3531_s1 + $0x30] sm:$0xff]   ;;  %v2468_v56 = vld [vmem:[%s3531_s1 + $0x38] sm:$0xff]   ;;  %v2469_v57 = vld [vmem:[%s3538_s28] sm:$0xff]  }
 0x1be   : > { %v2470_v58 = vld [vmem:[%s3538_s28 + $0x8] sm:$0xff]   ;;  %v2471_v59 = vld [vmem:[%s3538_s28 + $0x10] sm:$0xff]   ;;  %v2472_v60 = vld [vmem:[%s3538_s28 + $0x18] sm:$0xff]  }
 0x1bf   : > { %2126 = vmatpush3.bf16.msra.mxu0 %v813_v26  ;;  %v2473_v61 = vld [vmem:[%s3538_s28 + $0x20] sm:$0xff]   ;;  %v2474_v62 = vld [vmem:[%s3538_s28 + $0x28] sm:$0xff]  }
 0x1c0   : > { %2127 = vmatprep.subr.bf16.mxu0 %v814_v29  ;;  %2158 = vmatpush3.bf16.msra.mxu1 %v2463_v40 }
 0x1c1   : > { %2159 = vmatprep.subr.bf16.mxu1 %v2464_v43 }
 0x1c3   : > { %2128 = vmatpush3.bf16.msra.mxu0 %v814_v29 }
 0x1c4   : > { %2129 = vmatprep.subr.bf16.mxu0 %v815_v33  ;;  %2160 = vmatpush3.bf16.msra.mxu1 %v2464_v43  ;;  %v2475_v43 = vld [vmem:[%s3538_s28 + $0x30] sm:$0xff]  }
 0x1c5   : > { %2161 = vmatprep.subr.bf16.mxu1 %v2465_v46 }
 0x1c7   : > { %2130 = vmatpush3.bf16.msra.mxu0 %v815_v33 }
 0x1c8   : > { %2131 = vmatprep.subr.bf16.mxu0 %v816_v38  ;;  %2162 = vmatpush3.bf16.msra.mxu1 %v2465_v46 }
 0x1c9   : > { %2163 = vmatprep.subr.bf16.mxu1 %v2466_v47 }
 0x1cb   : > { %2132 = vmatpush3.bf16.msra.mxu0 %v816_v38 }
 0x1cc   : > { %2133 = vmatprep.subr.bf16.mxu0 %v817_v44  ;;  %2164 = vmatpush3.bf16.msra.mxu1 %v2466_v47 }
 0x1cd   : > { %2165 = vmatprep.subr.bf16.mxu1 %v2467_v55 }
 0x1cf   : > { %2134 = vmatpush3.bf16.msra.mxu0 %v817_v44 }
 0x1d0   : > { %2135 = vmatprep.subr.bf16.mxu0 %v818_v45  ;;  %2166 = vmatpush3.bf16.msra.mxu1 %v2467_v55 }
 0x1d1   : > { %2167 = vmatprep.subr.bf16.mxu1 %v2468_v56 }
 0x1d3   : > { %2136 = vmatpush3.bf16.msra.mxu0 %v818_v45 }
 0x1d4   : > { %2168 = vmatpush3.bf16.msra.mxu1 %v2468_v56  ;;  %2185 = vmatprep.subr.bf16.mxu0 %v2469_v57 }
 0x1d5   : > { %2277 = vmatprep.subr.bf16.mxu1 %v2469_v57 }
 0x1d6   : > { %2138 = vmatmul.mubr.bf16.vlgmr.msra.gmra.mrb[0].mxu0 %v2454_v48 }
 0x1d7   : > { %2141 = vmatprep.mubr.bf16.mxu0 %v2455_v49  ;;  %2186 = vmatpush3.bf16.msra.mxu0 %v2469_v57 }
 0x1d8   : > { %2187 = vmatprep.subr.bf16.mxu0 %v2470_v58 }
 0x1db   : > { %2188 = vmatpush3.bf16.msra.mxu0 %v2470_v58 }
 0x1dc   : > { %2189 = vmatprep.subr.bf16.mxu0 %v2471_v59 }
 0x1de   : > { %2142 = vmatmul.mubr.bf16.gmra.mrb[4].mxu0 %v2456_v50 }
 0x1df   : > { %2145 = vmatprep.mubr.bf16.mxu0 %v2457_v51  ;;  %2190 = vmatpush3.bf16.msra.mxu0 %v2471_v59 }
 0x1e0   : > { %2191 = vmatprep.subr.bf16.mxu0 %v2472_v60 }
 0x1e3   : > { %2192 = vmatpush3.bf16.msra.mxu0 %v2472_v60 }
 0x1e4   : > { %2193 = vmatprep.subr.bf16.mxu0 %v2473_v61 }
 0x1e6   : > { %2146 = vmatmul.mubr.bf16.gmra.mrb[8].mxu0 %v2458_v52 }
 0x1e7   : > { %2149 = vmatprep.mubr.bf16.mxu0 %v2459_v53  ;;  %2194 = vmatpush3.bf16.msra.mxu0 %v2473_v61 }
 0x1e8   : > { %2195 = vmatprep.subr.bf16.mxu0 %v2474_v62 }
 0x1eb   : > { %2196 = vmatpush3.bf16.msra.mxu0 %v2474_v62 }
 0x1ec   : > { %2197 = vmatprep.subr.bf16.mxu0 %v2475_v43 }
 0x1ee   : > { %2150 = vmatmul.mubr.bf16.gmra.mrb[12].mxu0 %v2460_v54 }
 0x1ef   : > { %2198 = vmatpush3.bf16.msra.mxu0 %v2475_v43 }
 0x2a9   : > { %v2139_v63 = vpop.f32.mrb[0].mxu0 }
 0x2aa   : > { %v901_v0 = vpop.f32.mrb[1].mxu0  ;;  %v966_v2 = vadd.f32 %v2139_v63, %v3565_v19 }
 0x2ab   : > { %v2140_v1 = vpop.f32.mrb[2].mxu0  ;;  %v964_v5 = vadd.f32 %v901_v0, %v3561_v17 }
 0x2ac   : > { %v967_v3 = vadd.f32 %v2140_v1, %v3569_v21  ;;  %v904_v4 = vpop.f32.mrb[3].mxu0 }
 0x2ad   : > { %v965_v6 = vadd.f32 %v904_v4, %v3563_v18 }
 0x2ae   : > { %v981_v7 = vpack.c.bf16 %v967_v3, %v966_v2 }
 0x2af   : > { %v980_v8 = vpack.c.bf16 %v965_v6, %v964_v5 }
 0x2b1   : > { %v2143_v9 = vpop.f32.mrb[4].mxu0  ;;  %2169 = vmatprep.mubr.bf16.mxu1 %v980_v8 }
 0x2b2   : > { %v917_v10 = vpop.f32.mrb[5].mxu0  ;;  %2170 = vmatmul.mubr.bf16.vlgmr.msra.gmra.mrb[0].mxu1 %v981_v7  ;;  %v970_v12 = vadd.f32 %v2143_v9, %v3577_v25 }
 0x2b3   : > { %v2144_v11 = vpop.f32.mrb[6].mxu0  ;;  %2285 = vmatpush3.bf16.msra.mxu1 %v2469_v57  ;;  %v968_v15 = vadd.f32 %v917_v10, %v3573_v23 }
 0x2b4   : > { %v971_v13 = vadd.f32 %v2144_v11, %v3581_v27  ;;  %v920_v14 = vpop.f32.mrb[7].mxu0  ;;  %2278 = vmatprep.subr.bf16.mxu1 %v2470_v58 }
 0x2b5   : > { %v969_v16 = vadd.f32 %v920_v14, %v3575_v24 }
 0x2b6   : > { %v983_v17 = vpack.c.bf16 %v971_v13, %v970_v12 }
 0x2b7   : > { %v982_v18 = vpack.c.bf16 %v969_v16, %v968_v15  ;;  %2286 = vmatpush3.bf16.msra.mxu1 %v2470_v58 }
 0x2b8   : > { %2279 = vmatprep.subr.bf16.mxu1 %v2471_v59 }
 0x2b9   : > { %v2147_v19 = vpop.f32.mrb[8].mxu0  ;;  %2173 = vmatprep.mubr.bf16.mxu1 %v982_v18 }
 0x2ba   : > { %v933_v20 = vpop.f32.mrb[9].mxu0  ;;  %2174 = vmatmul.mubr.bf16.gmra.mrb[4].mxu1 %v983_v17  ;;  %v974_v22 = vadd.f32 %v2147_v19, %v3589_v32 }
 0x2bb   : > { %v2148_v21 = vpop.f32.mrb[10].mxu0  ;;  %2287 = vmatpush3.bf16.msra.mxu1 %v2471_v59  ;;  %v972_v23 = vadd.f32 %v933_v20, %v3585_v30 }
 0x2bc   : > { %v975_v25 = vadd.f32 %v2148_v21, %v3593_v34  ;;  %v936_v26 = vpop.f32.mrb[11].mxu0  ;;  %2280 = vmatprep.subr.bf16.mxu1 %v2472_v60 }
 0x2bd   : > { %v973_v24 = vadd.f32 %v936_v26, %v3587_v31 }
 0x2be   : > { %v985_v27 = vpack.c.bf16 %v975_v25, %v974_v22 }
 0x2bf   : > { %v984_v28 = vpack.c.bf16 %v973_v24, %v972_v23  ;;  %2288 = vmatpush3.bf16.msra.mxu1 %v2472_v60 }
 0x2c0   : > { %2281 = vmatprep.subr.bf16.mxu1 %v2473_v61 }
 0x2c1   : > { %v2151_v29 = vpop.f32.mrb[12].mxu0  ;;  %2177 = vmatprep.mubr.bf16.mxu1 %v984_v28 }
 0x2c2   : > { %v949_v33 = vpop.f32.mrb[13].mxu0  ;;  %2178 = vmatmul.mubr.bf16.gmra.mrb[8].mxu1 %v985_v27  ;;  %v978_v32 = vadd.f32 %v2151_v29, %v3604_v41  ;;  %v2476_v41 = vld [vmem:[%s3538_s28 + $0x38] sm:$0xff]  }
 0x2c3   : > { %v2152_v35 = vpop.f32.mrb[14].mxu0  ;;  %2289 = vmatpush3.bf16.msra.mxu1 %v2473_v61  ;;  %v976_v30 = vadd.f32 %v949_v33, %v3597_v37  ;;  %2199 = vmatprep.subr.bf16.mxu0 %v2476_v41  ;;  %v2001_v37 = vld [vmem:[%s623_s4] ss:$0 sm:$0xff] }
 0x2c4   : > { %v979_v34 = vadd.f32 %v2152_v35, %v3606_v42  ;;  %v952_v36 = vpop.f32.mrb[15].mxu0  ;;  %2282 = vmatprep.subr.bf16.mxu1 %v2474_v62  ;;  %2200 = vmatpush3.bf16.msra.mxu0 %v2476_v41 }
 0x2c5   : > { %v977_v31 = vadd.f32 %v952_v36, %v3601_v39  ;;  %v3645_v36 = vld [vmem:[%s640_s30] ss:$0 sm:$0xff] }
 0x2c6   : > { %v987_v38 = vpack.c.bf16 %v979_v34, %v978_v32 }
 0x2c7   : > { %v986_v40 = vpack.c.bf16 %v977_v31, %v976_v30  ;;  %2290 = vmatpush3.bf16.msra.mxu1 %v2474_v62 }
 0x2c8   : > { %2283 = vmatprep.subr.bf16.mxu1 %v2475_v43 }
 0x2c9   : > { %2181 = vmatprep.mubr.bf16.mxu1 %v986_v40  ;;  %v3650_v40 = vld [vmem:[%s648_s7] ss:$0 sm:$0xff] }
 0x2ca   : > { %2182 = vmatmul.mubr.bf16.gmra.mrb[12].mxu1 %v987_v38 }
 0x2cb   : > { %2291 = vmatpush3.bf16.msra.mxu1 %v2475_v43 }
 0x2cc   : > { %2284 = vmatprep.subr.bf16.mxu1 %v2476_v41 }
 0x2cf   : > { %2292 = vmatpush3.bf16.msra.mxu1 %v2476_v41 }
 0x385   : > { %v2171_v42 = vpop.f32.mrb[0].mxu1 }
 0x386   : > { %v1102_v39 = vadd.f32 %v2171_v42, %v2001_v37  ;;  %v1093_v44 = vpop.f32.mrb[1].mxu1 }
 0x387   : > { %v1094_v45 = vadd.f32 %v2001_v37, %v1093_v44  ;;  %v2172_v46 = vpop.f32.mrb[2].mxu1  ;;  %v3656_v44 = vld [vmem:[%s656_s29] ss:$0 sm:$0xff] }
 0x388   : > { %v1105_v47 = vadd.f32 %v2172_v46, %v2001_v37  ;;  %v1096_v48 = vpop.f32.mrb[3].mxu1  ;;  %v1158_v50 = vmax.f32 %v1102_v39, 0.0 }
 0x389   : > { %v1097_v49 = vadd.f32 %v2001_v37, %v1096_v48  ;;  %v1156_v52 = vmax.f32 %v1094_v45, 0.0 }
 0x38a   : > { %v1159_v51 = vmax.f32 %v1105_v47, 0.0 }
 0x38b   : > { %v1157_v53 = vmax.f32 %v1097_v49, 0.0 }
 0x38c   : > { %v1173_v54 = vpack.c.bf16 %v1159_v51, %v1158_v50 }
 0x38d   : > { %v1172_v55 = vpack.c.bf16 %v1157_v53, %v1156_v52  ;;  %v2175_v56 = vpop.f32.mrb[4].mxu1 }
 0x38e   : > { %v1118_v57 = vadd.f32 %v2175_v56, %v2001_v37  ;;  %v1109_v58 = vpop.f32.mrb[5].mxu1 }
 0x38f   : > { %v1110_v59 = vadd.f32 %v2001_v37, %v1109_v58  ;;  %v2176_v60 = vpop.f32.mrb[6].mxu1  ;;  %2201 = vmatprep.mubr.bf16.mxu0 %v1172_v55 }
 0x390   : > { %v1121_v61 = vadd.f32 %v2176_v60, %v2001_v37  ;;  %v1112_v62 = vpop.f32.mrb[7].mxu1  ;;  %2202 = vmatmul.mubr.bf16.vlgmr.msra.gmra.mrb[16].mxu0 %v1173_v54  ;;  %v1162_v0 = vmax.f32 %v1118_v57, 0.0 }
 0x391   : > { %v1113_v63 = vadd.f32 %v2001_v37, %v1112_v62  ;;  %v1160_v2 = vmax.f32 %v1110_v59, 0.0 }
 0x392   : > { %v1163_v1 = vmax.f32 %v1121_v61, 0.0 }
 0x393   : > { %v1161_v3 = vmax.f32 %v1113_v63, 0.0 }
 0x394   : > { %v1175_v4 = vpack.c.bf16 %v1163_v1, %v1162_v0 }
 0x395   : > { %v1174_v5 = vpack.c.bf16 %v1161_v3, %v1160_v2  ;;  %v2179_v6 = vpop.f32.mrb[8].mxu1 }
 0x396   : > { %v1134_v7 = vadd.f32 %v2179_v6, %v2001_v37  ;;  %v1125_v8 = vpop.f32.mrb[9].mxu1 }
 0x397   : > { %v1126_v9 = vadd.f32 %v2001_v37, %v1125_v8  ;;  %v2180_v10 = vpop.f32.mrb[10].mxu1  ;;  %2205 = vmatprep.mubr.bf16.mxu0 %v1174_v5 }
 0x398   : > { %v1137_v11 = vadd.f32 %v2180_v10, %v2001_v37  ;;  %v1128_v12 = vpop.f32.mrb[11].mxu1  ;;  %2206 = vmatmul.mubr.bf16.gmra.mrb[20].mxu0 %v1175_v4  ;;  %v1166_v14 = vmax.f32 %v1134_v7, 0.0 }
 0x399   : > { %v1129_v13 = vadd.f32 %v2001_v37, %v1128_v12  ;;  %v1164_v16 = vmax.f32 %v1126_v9, 0.0 }
 0x39a   : > { %v1167_v15 = vmax.f32 %v1137_v11, 0.0 }
 0x39b   : > { %v1165_v17 = vmax.f32 %v1129_v13, 0.0 }
 0x39c   : > { %v1177_v18 = vpack.c.bf16 %v1167_v15, %v1166_v14 }
 0x39d   : > { %v1176_v19 = vpack.c.bf16 %v1165_v17, %v1164_v16  ;;  %v2183_v20 = vpop.f32.mrb[12].mxu1 }
 0x39e   : > { %v1150_v21 = vadd.f32 %v2183_v20, %v2001_v37  ;;  %v1141_v22 = vpop.f32.mrb[13].mxu1 }
 0x39f   : > { %v1142_v25 = vadd.f32 %v2001_v37, %v1141_v22  ;;  %v2184_v26 = vpop.f32.mrb[14].mxu1  ;;  %2209 = vmatprep.mubr.bf16.mxu1 %v1176_v19 }
 0x3a0   : > { %v1153_v23 = vadd.f32 %v2184_v26, %v2001_v37  ;;  %v1144_v24 = vpop.f32.mrb[15].mxu1  ;;  %2210 = vmatmul.mubr.bf16.vlgmr.msra.gmra.mrb[16].mxu1 %v1177_v18  ;;  %v1170_v28 = vmax.f32 %v1150_v21, 0.0 }
 0x3a1   : > { %v1145_v27 = vadd.f32 %v2001_v37, %v1144_v24  ;;  %v1168_v33 = vmax.f32 %v1142_v25, 0.0 }
 0x3a2   : > { %v1171_v29 = vmax.f32 %v1153_v23, 0.0 }
 0x3a3   : > { %v1169_v35 = vmax.f32 %v1145_v27, 0.0 }
 0x3a4   : > { %v1179_v32 = vpack.c.bf16 %v1171_v29, %v1170_v28 }
 0x3a5   : > { %v1178_v34 = vpack.c.bf16 %v1169_v35, %v1168_v33 }
 0x3a7   : > { %2213 = vmatprep.mubr.bf16.mxu1 %v1178_v34 }
 0x3a8   : > { %2214 = vmatmul.mubr.bf16.gmra.mrb[20].mxu1 %v1179_v32 }
 0x463   : > { %v2203_v30 = vpop.f32.mrb[16].mxu0 }
 0x464   : > { %v1294_v31 = vadd.f32 %v2203_v30, %v3645_v36  ;;  %v1285_v38 = vpop.f32.mrb[17].mxu0 }
 0x465   : > { %v1286_v43 = vadd.f32 %v3645_v36, %v1285_v38  ;;  %v2204_v41 = vpop.f32.mrb[18].mxu0 }
 0x466   : > { %v1350_v37 = vmax.f32 %v1294_v31, 0.0  ;;  %v1297_v42 = vadd.f32 %v2204_v41, %v3645_v36  ;;  %v1288_v39 = vpop.f32.mrb[19].mxu0 }
 0x467   : > { %v1348_v45 = vmax.f32 %v1286_v43, 0.0  ;;  %v1289_v46 = vadd.f32 %v3645_v36, %v1288_v39 }
 0x468   : > { %v1373_v47 = vmul.f32 %v3650_v40, %v1350_v37  ;;  %v1351_v48 = vmax.f32 %v1297_v42, 0.0 }
 0x469   : > { %v1371_v49 = vmul.f32 %v3650_v40, %v1348_v45  ;;  %v1349_v50 = vmax.f32 %v1289_v46, 0.0 }
 0x46a   : > { %v1396_v51 = vadd.f32 %v3656_v44, %v1373_v47  ;;  %v1374_v52 = vmul.f32 %v3650_v40, %v1351_v48 }
 0x46b   : > { %v1394_v53 = vadd.f32 %v3656_v44, %v1371_v49  ;;  %v1372_v54 = vmul.f32 %v3650_v40, %v1349_v50  ;;  %v2207_v55 = vpop.f32.mrb[20].mxu0 }
 0x46c   : > { %1412 = vst [vmem:[#allocation2 + $0x10] sm:$0xff] %v1396_v51  ;;  %v1397_v56 = vadd.f32 %v3656_v44, %v1374_v52  ;;  %v1310_v57 = vadd.f32 %v2207_v55, %v3645_v36  ;;  %v1301_v58 = vpop.f32.mrb[21].mxu0 }
 0x46d   : > { %1410 = vst [vmem:[#allocation2] sm:$0xff] %v1394_v53  ;;  %v1395_v59 = vadd.f32 %v3656_v44, %v1372_v54  ;;  %v1302_v60 = vadd.f32 %v3645_v36, %v1301_v58  ;;  %v2208_v61 = vpop.f32.mrb[22].mxu0  ;;  %v3011_v58 = vmov (!%p2021_p2), 0.0  }
 0x46e   : > { %1413 = vst [vmem:[#allocation2 + $0x18] sm:$0xff] %v1397_v56  ;;  %v1354_v62 = vmax.f32 %v1310_v57, 0.0  ;;  %v1313_v63 = vadd.f32 %v2208_v61, %v3645_v36  ;;  %v1304_v0 = vpop.f32.mrb[23].mxu0  ;;  %2217 = vmatprep.subr.bf16.mxu0 (!%p2021_p2), %v3011_v58  ;;  %2233 = vmatprep.mubr.msk.bf16.mxu0 (!%p2021_p2), %vm3012_vm0, %v3011_v58 }
 0x46f   : > { %1411 = vst [vmem:[#allocation2 + $0x8] sm:$0xff] %v1395_v59  ;;  %v1352_v1 = vmax.f32 %v1302_v60, 0.0  ;;  %v1305_v2 = vadd.f32 %v3645_v36, %v1304_v0  ;;  %2237 = vmatprep.subr.bf16.mxu1 (!%p2021_p2), %v3011_v58  ;;  %2253 = vmatprep.mubr.msk.bf16.mxu1 (!%p2021_p2), %vm3012_vm0, %v3011_v58 }
 0x470   : > { %v1377_v3 = vmul.f32 %v3650_v40, %v1354_v62  ;;  %v1355_v4 = vmax.f32 %v1313_v63, 0.0  ;;  %v1495_v63 = vld [vmem:[#allocation15] sm:$0xff] (!%p2021_p2) }
 0x471   : > { %v1375_v5 = vmul.f32 %v3650_v40, %v1352_v1  ;;  %v1353_v6 = vmax.f32 %v1305_v2, 0.0  ;;  %v2478_v1 = vld [vmem:[#allocation17] sm:$0xff] (!%p2021_p2)  }
 0x472   : > { %v1400_v7 = vadd.f32 %v3656_v44, %v1377_v3  ;;  %v1378_v8 = vmul.f32 %v3650_v40, %v1355_v4  ;;  %2238 = vmatpush3.bf16.msra.mxu1 (!%p2021_p2), %v2478_v1  ;;  %v2479_v4 = vld [vmem:[#allocation17 + $0x8] sm:$0xff] (!%p2021_p2)  }
 0x473   : > { %v1398_v9 = vadd.f32 %v3656_v44, %v1375_v5  ;;  %v1376_v10 = vmul.f32 %v3650_v40, %v1353_v6  ;;  %v2211_v11 = vpop.f32.mrb[16].mxu1  ;;  %v1432_v57 = vld [vmem:[#allocation2 + $0x10] sm:$0xff] (!%p2021_p2)  ;;  %2239 = vmatprep.subr.bf16.mxu1 (!%p2021_p2), %v3011_v58 }
 0x474   : > { %1416 = vst [vmem:[#allocation2 + $0x30] sm:$0xff] %v1400_v7  ;;  %v1401_v12 = vadd.f32 %v3656_v44, %v1378_v8  ;;  %v1326_v13 = vadd.f32 %v2211_v11, %v3645_v36  ;;  %v1317_v14 = vpop.f32.mrb[17].mxu1  ;;  %v1430_v55 = vld [vmem:[#allocation2] sm:$0xff] (!%p2021_p2)  ;;  %v2481_v11 = vld [vmem:[#allocation17 + $0x18] sm:$0xff] (!%p2021_p2)  }
 0x475   : > { %1414 = vst [vmem:[#allocation2 + $0x20] sm:$0xff] %v1398_v9  ;;  %v1399_v15 = vadd.f32 %v3656_v44, %v1376_v10  ;;  %v1318_v16 = vadd.f32 %v3645_v36, %v1317_v14  ;;  %v2212_v17 = vpop.f32.mrb[18].mxu1  ;;  %v1433_v60 = vld [vmem:[#allocation2 + $0x18] sm:$0xff] (!%p2021_p2)  ;;  %v2480_v8 = vld [vmem:[#allocation17 + $0x10] sm:$0xff] (!%p2021_p2)  }
 0x476   : > { %1417 = vst [vmem:[#allocation2 + $0x38] sm:$0xff] %v1401_v12  ;;  %v1358_v18 = vmax.f32 %v1326_v13, 0.0  ;;  %v1329_v19 = vadd.f32 %v2212_v17, %v3645_v36  ;;  %v1320_v20 = vpop.f32.mrb[19].mxu1  ;;  %v1431_v56 = vld [vmem:[#allocation2 + $0x8] sm:$0xff] (!%p2021_p2)  ;;  %2240 = vmatpush3.bf16.msra.mxu1 (!%p2021_p2), %v2479_v4 }
 0x477   : > { %1415 = vst [vmem:[#allocation2 + $0x28] sm:$0xff] %v1399_v15  ;;  %v1356_v21 = vmax.f32 %v1318_v16, 0.0  ;;  %v1321_v22 = vadd.f32 %v3645_v36, %v1320_v20  ;;  %v1446_v59 = vpack.c.bf16 (!%p2021_p2), %v1431_v56, %v1430_v55  ;;  %2241 = vmatprep.subr.bf16.mxu1 (!%p2021_p2), %v3011_v58  ;;  %v2482_v16 = vld [vmem:[#allocation17 + $0x20] sm:$0xff] (!%p2021_p2)   ;;  %v2483_v20 = vld [vmem:[#allocation17 + $0x28] sm:$0xff] (!%p2021_p2)  }
 0x478   : > { %v1381_v25 = vmul.f32 %v3650_v40, %v1358_v18  ;;  %v1359_v26 = vmax.f32 %v1329_v19, 0.0 }
 0x479   : > { %v1379_v23 = vmul.f32 %v3650_v40, %v1356_v21  ;;  %v1357_v24 = vmax.f32 %v1321_v22, 0.0  ;;  %2218 = vmatpush3.bf16.msra.mxu0 (!%p2021_p2), %v1446_v59  ;;  %v2484_v22 = vld [vmem:[#allocation17 + $0x30] sm:$0xff] (!%p2021_p2)  }
 0x47a   : > { %v1404_v27 = vadd.f32 %v3656_v44, %v1381_v25  ;;  %v1382_v28 = vmul.f32 %v3650_v40, %v1359_v26  ;;  %2219 = vmatprep.subr.bf16.mxu0 (!%p2021_p2), %v3011_v58  ;;  %2242 = vmatpush3.bf16.msra.mxu1 (!%p2021_p2), %v2480_v8  ;;  %v1454_v25 = vld [vmem:[#allocation14] sm:$0xf] (!%p2021_p2)  ;;  %v2485_v26 = vld [vmem:[#allocation17 + $0x38] sm:$0xff] (!%p2021_p2)  }
 0x47b   : > { %v1402_v29 = vadd.f32 %v3656_v44, %v1379_v23  ;;  %v1380_v33 = vmul.f32 %v3650_v40, %v1357_v24  ;;  %v2215_v35 = vpop.f32.mrb[20].mxu1  ;;  %v1436_v0 = vld [vmem:[#allocation2 + $0x30] sm:$0xff] (!%p2021_p2)  ;;  %2243 = vmatprep.subr.bf16.mxu1 (!%p2021_p2), %v3011_v58  ;;  %v2487_v24 = vld [vmem:[#allocation20 + $0x8] sm:$0xff] (!%p2021_p2)  }
 0x47c   : > { %1420 = vst [vmem:[#allocation2 + $0x50] sm:$0xff] %v1404_v27  ;;  %v1405_v32 = vadd.f32 %v3656_v44, %v1382_v28  ;;  %v1342_v34 = vadd.f32 %v2215_v35, %v3645_v36  ;;  %v1333_v30 = vpop.f32.mrb[21].mxu1  ;;  %v1434_v61 = vld [vmem:[#allocation2 + $0x20] sm:$0xff] (!%p2021_p2)  ;;  %v2486_v23 = vld [vmem:[#allocation20] sm:$0xff] (!%p2021_p2)   ;;  %v2489_v28 = vld [vmem:[#allocation20 + $0x18] sm:$0xff] (!%p2021_p2)  }
 0x47d   : > { %1418 = vst [vmem:[#allocation2 + $0x40] sm:$0xff] %v1402_v29  ;;  %v1403_v31 = vadd.f32 %v3656_v44, %v1380_v33  ;;  %v1334_v38 = vadd.f32 %v3645_v36, %v1333_v30  ;;  %v2216_v43 = vpop.f32.mrb[22].mxu1  ;;  %v1437_v3 = vld [vmem:[#allocation2 + $0x38] sm:$0xff] (!%p2021_p2)  ;;  %v2488_v27 = vld [vmem:[#allocation20 + $0x10] sm:$0xff] (!%p2021_p2)  }
 0x47e   : > { %1421 = vst [vmem:[#allocation2 + $0x58] sm:$0xff] %v1405_v32  ;;  %v1362_v41 = vmax.f32 %v1342_v34, 0.0  ;;  %v1345_v37 = vadd.f32 %v2216_v43, %v3645_v36  ;;  %v1336_v42 = vpop.f32.mrb[23].mxu1  ;;  %v1435_v62 = vld [vmem:[#allocation2 + $0x28] sm:$0xff] (!%p2021_p2)  ;;  %v1449_v6 = vpack.c.bf16 (!%p2021_p2), %v1437_v3, %v1436_v0  ;;  %2244 = vmatpush3.bf16.msra.mxu1 (!%p2021_p2), %v2481_v11  ;;  %v2490_v29 = vld [vmem:[#allocation20 + $0x20] sm:$0xff] (!%p2021_p2)   ;;  %v2491_v33 = vld [vmem:[#allocation20 + $0x28] sm:$0xff] (!%p2021_p2)  }
 0x47f   : > { %1419 = vst [vmem:[#allocation2 + $0x48] sm:$0xff] %v1403_v31  ;;  %v1360_v39 = vmax.f32 %v1334_v38, 0.0  ;;  %v1337_v45 = vadd.f32 %v3645_v36, %v1336_v42  ;;  %v1448_v2 = vpack.c.bf16 (!%p2021_p2), %v1435_v62, %v1434_v61  ;;  %2245 = vmatprep.subr.bf16.mxu1 (!%p2021_p2), %v3011_v58  ;;  %v2022_v42 = vld [vmem:[#allocation18] ss:$0 sm:$0xff] (!%p2021_p2) }
 0x480   : > { %v1385_v46 = vmul.f32 %v3650_v40, %v1362_v41  ;;  %v1363_v47 = vmax.f32 %v1345_v37, 0.0  ;;  %v2492_v41 = vld [vmem:[#allocation20 + $0x30] sm:$0xff] (!%p2021_p2)   ;;  %v2493_v37 = vld [vmem:[#allocation20 + $0x38] sm:$0xff] (!%p2021_p2)  }
 0x481   : > { %v1383_v48 = vmul.f32 %v3650_v40, %v1360_v39  ;;  %v1361_v49 = vmax.f32 %v1337_v45, 0.0  ;;  %1429 = sbr.rel (%p2021_p2) target bundleno = 2151 (0x867), region = 140 }
 0x482   : > { %v1408_v50 = vadd.f32 %v3656_v44, %v1385_v46  ;;  %v1386_v51 = vmul.f32 %v3650_v40, %v1363_v47  ;;  %2246 = vmatpush3.bf16.msra.mxu1 (!%p2021_p2), %v2482_v16 }
 0x483   : > { %v1406_v52 = vadd.f32 %v3656_v44, %v1383_v48  ;;  %v1384_v53 = vmul.f32 %v3650_v40, %v1361_v49  ;;  %v3013_v40 = vmov (!%p2021_p2), 0   ;;  %v1440_v9 = vld [vmem:[#allocation2 + $0x50] sm:$0xff] (!%p2021_p2)  ;;  %2247 = vmatprep.subr.bf16.mxu1 (!%p2021_p2), %v3011_v58 }
 0x484   : > { %1424 = vst [vmem:[#allocation2 + $0x70] sm:$0xff] %v1408_v50  ;;  %v1409_v54 = vadd.f32 %v3656_v44, %v1386_v51  ;;  %2477 = vset.pattern.permute.xlu0 (!%p2021_p2), %v3013_v40  ;;  %v1438_v5 = vld [vmem:[#allocation2 + $0x40] sm:$0xff] (!%p2021_p2)  ;;  %v2031_v51 = vld [vmem:[#allocation21] ss:$0 sm:$0xff] (!%p2021_p2) }
 0x485   : > { %1422 = vst [vmem:[#allocation2 + $0x60] sm:$0xff] %v1406_v52  ;;  %v1407_v36 = vadd.f32 %v3656_v44, %v1384_v53  ;;  %v1447_v44 = vpack.c.bf16 (!%p2021_p2), %v1433_v60, %v1432_v57  ;;  %1498 = vperm.xlu0 (!%p2021_p2), %2477, %v1495_v63   ;;  %v1441_v10 = vld [vmem:[#allocation2 + $0x58] sm:$0xff] (!%p2021_p2) }
 0x486   : > { %1425 = vst [vmem:[#allocation2 + $0x78] sm:$0xff] %v1409_v54  ;;  %v1439_v7 = vld [vmem:[#allocation2 + $0x48] sm:$0xff] (!%p2021_p2)  ;;  %v1451_v13 = vpack.c.bf16 (!%p2021_p2), %v1441_v10, %v1440_v9  ;;  %2248 = vmatpush3.bf16.msra.mxu1 (!%p2021_p2), %v2483_v20 }
 0x487   : > { %1423 = vst [vmem:[#allocation2 + $0x68] sm:$0xff] %v1407_v36  ;;  %2220 = vmatpush3.bf16.msra.mxu0 (!%p2021_p2), %v1447_v44  ;;  %v1450_v12 = vpack.c.bf16 (!%p2021_p2), %v1439_v7, %v1438_v5  ;;  %2249 = vmatprep.subr.bf16.mxu1 (!%p2021_p2), %v3011_v58 }
 0x488   : > { %2221 = vmatprep.subr.bf16.mxu0 %v3011_v58 }
 0x48a   : > { %2250 = vmatpush3.bf16.msra.mxu1 %v2484_v22 }
 0x48b   : > { %2222 = vmatpush3.bf16.msra.mxu0 %v1448_v2  ;;  %v1444_v18 = vld [vmem:[#allocation2 + $0x70] sm:$0xff]  ;;  %2251 = vmatprep.subr.bf16.mxu1 %v3011_v58 }
 0x48c   : > { %2223 = vmatprep.subr.bf16.mxu0 %v3011_v58  ;;  %v1442_v14 = vld [vmem:[#allocation2 + $0x60] sm:$0xff] }
 0x48d   : > { %v1445_v19 = vld [vmem:[#allocation2 + $0x78] sm:$0xff] }
 0x48e   : > { %v1443_v15 = vld [vmem:[#allocation2 + $0x68] sm:$0xff]  ;;  %v1453_v21 = vpack.c.bf16 %v1445_v19, %v1444_v18  ;;  %2252 = vmatpush3.bf16.msra.mxu1 %v2485_v26 }
 0x48f   : > { %2224 = vmatpush3.bf16.msra.mxu0 %v1449_v6  ;;  %v1452_v17 = vpack.c.bf16 %v1443_v15, %v1442_v14 }
 0x490   : > { %2225 = vmatprep.subr.bf16.mxu0 %v3011_v58 }
 0x493   : > { %2226 = vmatpush3.bf16.msra.mxu0 %v1450_v12 }
 0x494   : > { %2227 = vmatprep.subr.bf16.mxu0 %v3011_v58 }
 0x497   : > { %2228 = vmatpush3.bf16.msra.mxu0 %v1451_v13 }
 0x498   : > { %2229 = vmatprep.subr.bf16.mxu0 %v3011_v58 }
 0x49b   : > { %2230 = vmatpush3.bf16.msra.mxu0 %v1452_v17 }
 0x49c   : > { %2231 = vmatprep.subr.bf16.mxu0 %v3011_v58 }
 0x49f   : > { %2232 = vmatpush3.bf16.msra.mxu0 %v1453_v21 }
 0x4a0   : > { %2257 = vmatprep.subr.bf16.mxu0 %v3011_v58 }
 0x4a2   : > { %2234 = vmatmul.mubr.bf16.vlgmr.msra.gmra.mrb[0].mxu0 %v1454_v25 }
 0x4a3   : > { %2273 = vmatprep.mubr.msk.bf16.mxu0 %vm3012_vm0, %v3011_v58  ;;  %2258 = vmatpush3.bf16.msra.mxu0 %v2486_v23 }
 0x4a4   : > { %2259 = vmatprep.subr.bf16.mxu0 %v3011_v58 }
 0x4a7   : > { %2260 = vmatpush3.bf16.msra.mxu0 %v2487_v24 }
 0x4a8   : > { %2261 = vmatprep.subr.bf16.mxu0 %v3011_v58 }
 0x4ab   : > { %2262 = vmatpush3.bf16.msra.mxu0 %v2488_v27 }
 0x4ac   : > { %2263 = vmatprep.subr.bf16.mxu0 %v3011_v58 }
 0x4af   : > { %2264 = vmatpush3.bf16.msra.mxu0 %v2489_v28 }
 0x4b0   : > { %2265 = vmatprep.subr.bf16.mxu0 %v3011_v58 }
 0x4b3   : > { %2266 = vmatpush3.bf16.msra.mxu0 %v2490_v29 }
 0x4b4   : > { %2267 = vmatprep.subr.bf16.mxu0 %v3011_v58 }
 0x4b7   : > { %2268 = vmatpush3.bf16.msra.mxu0 %v2491_v33 }
 0x4b8   : > { %2269 = vmatprep.subr.bf16.mxu0 %v3011_v58 }
 0x4bb   : > { %2270 = vmatpush3.bf16.msra.mxu0 %v2492_v41 }
 0x4bc   : > { %2271 = vmatprep.subr.bf16.mxu0 %v3011_v58 }
 0x4bf   : > { %2272 = vmatpush3.bf16.msra.mxu0 %v2493_v37 }
 0x504   : > { %v1499_v35 = vpop.permute.xlu0 %1498 }
 0x575   : > { %v1489_v32 = vpop.f32.mrb[0].mxu0 }
 0x576   : > { %v1501_v34 = vmul.f32 %v1499_v35, %v1489_v32  ;;  %v2235_v30 = vpop.f32.mrb[1].mxu0 }
 0x577   : > { %v1492_v31 = vpop.f32.mrb[2].mxu0 }
 0x578   : > { %v1502_v38 = vpack.c.bf16 %v1501_v34, %v1501_v34  ;;  %v2236_v43 = vpop.f32.mrb[3].mxu0 }
 0x57a   : > { %2254 = vmatmul.mubr.bf16.vlgmr.msra.gmra.mrb[0].mxu1 %v1502_v38 }
 0x64d   : > { %v1608_v39 = vpop.f32.mrb[0].mxu1 }
 0x64e   : > { %v1609_v45 = vadd.f32 %v2022_v42, %v1608_v39  ;;  %v2255_v46 = vpop.f32.mrb[1].mxu1 }
 0x64f   : > { %v1611_v47 = vpop.f32.mrb[2].mxu1 }
 0x650   : > { %v1614_v48 = vmax.f32 %v1609_v45, 0.0  ;;  %v2256_v49 = vpop.f32.mrb[3].mxu1 }
 0x652   : > { %v1615_v50 = vpack.c.bf16 %v1614_v48, %v1614_v48 }
 0x654   : > { %2274 = vmatmul.mubr.bf16.vlgmr.msra.gmra.mrb[4].mxu0 %v1615_v50 }
 0x727   : > { %v1721_v52 = vpop.f32.mrb[4].mxu0 }
 0x728   : > { %v1722_v53 = vadd.f32 %v2031_v51, %v1721_v52  ;;  %v2275_v54 = vpop.f32.mrb[5].mxu0 }
 0x729   : > { %v1724_v36 = vpop.f32.mrb[6].mxu0 }
 0x72a   : > { %1727 = vmax.xlane.f32.xlu0 %v1722_v53  ;;  %v2276_v55 = vpop.f32.mrb[7].mxu0 }
 0x7b7   : > { %v1728_v56 = vpop.xlane.xlu0 %1727 }
 0x7b8   : > { %v1729_v57 = vsub.f32 %v1722_v53, %v1728_v56 }
 0x7ba   : > { %v1730_v58 = vmul.f32 1.442695, %v1729_v57 }
 0x7bc   : > { %2494 = vpow2.f32 %v1730_v58 }
 0x7c6   : > { %v2495_v59 = vpop.eup %2494 }
 0x7c7   : > { %1732 = vadd.xlane.f32.xlu1 %v2495_v59 }
 0x854   : > { %v1733_v60 = vpop.xlane.xlu1 %1732 }
 0x855   : > { %2496 = vlog2.f32 %v1733_v60 }
 0x85f   : > { %v2497_v40 = vpop.eup %2496 }
 0x860   : > { %v1735_v44 = vmul.f32 0.6931472, %v2497_v40 }
 0x862   : > { %v1736_v61 = vadd.f32 %v1735_v44, %v1728_v56 }
 0x864   : > { %v1737_v62 = vsub.f32 %v1722_v53, %v1736_v61 }
 0x866   : > { %1738 = vst [vmem:[#allocation23] sm:$0xff] %v1737_v62 }
 0x867 PF: > { %s3880_s3 = sld [smem:[#allocation34_spill]]  ;;  %s3014_s13 = smov [#allocation23]  }
 0x868   : > { %s1746_s17 = sshll.u32 %s3014_s13, 4  ;;  %s1747_s17 = int_to_ptr.vmem [resolvable:$true] %s1746_s17 }
 0x869   : > { %s2902_s25 = scalar_lea.vmem %s1747_s17, 128  ;;  %p2909_p4 = scmp.lt.s32.totalorder %s1747_s17, %s1747_s17 }
 0x86a   : > { %p2903_p0 = scmp.ne.s32.totalorder %s1747_s17, %s2902_s25  ;;  %p2910_p8 = scmp.lt.s32.totalorder %s2902_s25, %s2902_s25 }
 0x86c   : > { %p2911_p1 = por %p2910_p8, %p2909_p4 }
 0x86d   : > { %p2402_p9 = scmp.eq.s32.totalorder %s3880_s3, 2 }
 0x86f   : > { %p2904_p11 = pnand %p2903_p0, %p2402_p9 }
 0x871   : > { %p2905_p3 = pneg %p2904_p11 }
 0x873   : > { %p2912_p13 = pnand %p2911_p1, %p2905_p3 }
 0x875   : > { %2915 = shalt.err (!%p2912_p13)
}
 0x876   : > { %s3881_s19 = sld [smem:[#allocation46_spill]] }
 0x87c   : > { %s2916_s22 = scalar_lea.hbm %s3881_s19, 128 }
 0x87d   : > { %p2917_p6 = scmp.ne.s32.totalorder %s3881_s19, %s2916_s22  ;;  %p2922_p12 = scmp.lt.u32.totalorder %s2916_s22, %s3881_s19 }
 0x87f   : > { %p2918_p7 = pnand %p2917_p6, %p2402_p9 }
 0x881   : > { %p2919_p10 = pneg %p2918_p7 }
 0x883   : > { %p2924_p5 = pnand %p2922_p12, %p2919_p10 }
 0x885   : > { %2927 = shalt.err (!%p2924_p5)
}
 0x886   : > { %2338 = dma.vmem_to_hbm [thread:$0]  (%p2402_p9), %s1747_s17, 128, %s3881_s19, [#allocation5]  }
 0x887   : > { %2973 = dma.done.wait (%p2402_p9), [#allocation5], 128  }
 0x888   : > { %2975 = vsyncadd (%p2402_p9), [#allocation5], 4294967168 }
 0x889 PF: > { %s3882_s16 = sld [smem:[#allocation36_spill]]  ;;  %s3883_s29 = sld [smem:[#allocation32_spill]] }
 0x88a   : > { %s3884_s30 = sld [smem:[#allocation33_spill]]  ;;  %s3885_s15 = sld [smem:[#allocation37_spill]] }
 0x88f   : > { %p27_p2 = scmp.ge.s32.totalorder %s3882_s16, 5  }
 0x891   :  { %29 = sbr.rel (!%p27_p2) target bundleno = 16 (0x10), region = 207 }
 0x898   :  { %1759 = vsyncpa [#allocation4], 1 }
 0x899   :  { %1761 = vsyncpa [#allocation4 + $0x1], 1 }
 0x89a   :  { %1762 = vsyncpa [#allocation7], 1 }
 0x89b   :  { %1763 = vsyncpa [#allocation16], 1 }
 0x89c   :  { %1764 = vsyncpa [#allocation19], 1 }
 0x89d   :  { %1765 = vsyncpa [#allocation22], 1 }
 0x89e   :  { %1766 = vsyncpa [#allocation5], 1 }
 0x89f   :  { %1768 = vsyncpa [#allocation5 + $0x1], 1 }

</bundles_post_ra>
